<compile_context>
chip_gen: v5e
topology: v5e:2x2
jax: 0.10.0
libtpu: 0.0.40
codegen_flags: <defaults>
</compile_context>

<pallas_src>
import numpy as np
import jax
import jax.numpy as jnp
from jax import lax
from jax.experimental import pallas as pl
from jax.experimental.pallas import tpu as pltpu

_LANE_PAD = 128   # left/right halo of the assembly buffer (>= W+1, lane aligned)


# ----------------------------------------------------------------------------
# Trace-time constant builders (numpy)
# ----------------------------------------------------------------------------
def bilinear_matrix_np(n_out, n_in):
    """Interpolation matrix for torch.nn.Upsample(mode='bilinear', align_corners=True)."""
    A = np.zeros((n_out, n_in), dtype=np.float32)
    if n_in == 1:
        A[:, 0] = 1.0
        return A
    scale = 0.0 if n_out == 1 else (n_in - 1) / (n_out - 1)
    for i in range(n_out):
        src = i * scale
        i0 = min(int(np.floor(src)), n_in - 1)
        i1 = min(i0 + 1, n_in - 1)
        w1 = src - i0
        A[i, i0] += 1.0 - w1
        A[i, i1] += w1
    return A


def _round_up8(n):
    return -(-n // 8) * 8


# ----------------------------------------------------------------------------
# Fused Pallas kernel (one per static Block configuration)
# ----------------------------------------------------------------------------
def _make_block_kernel(groups_meta, n_up, c_in_pad, c_out, H, W, bs):
    """groups_meta: tuple of (c_g, t_idx (-1 => full resolution), off_g)."""
    hw = H * W
    pad = _LANE_PAD
    xw = pad + hw + pad
    n_g = len(groups_meta)
    rows = bs * c_in_pad

    def kernel(*refs):
        x_refs = refs[:n_g]                   # activations, (1, bs*c_g, hin*win)
        t_refs = refs[n_g:n_g + n_up]         # bilinear matrices, (hin*win, hw)
        w2_ref = refs[n_g + n_up]             # (9, c_out, c_in_pad), BN scale folded
        shift_ref = refs[n_g + n_up + 1]      # (c_out, 1)
        mask_ref = refs[n_g + n_up + 2]       # (2, hw) column-validity masks
        o_ref = refs[n_g + n_up + 3]          # (1, bs*c_out, hw)
        xpad_ref = refs[n_g + n_up + 4]       # scratch (rows, pad+hw+pad)

        # Zero halo / pad channels every step (scratch is uninitialized VMEM and
        # a 'parallel' grid axis may be split across cores, so no pid==0 trick).
        xpad_ref[...] = jnp.zeros((rows, xw), jnp.float32)

        # ---- Stage 1: bilinear upsample (one small MXU matmul per low-res
        # group, identity for full-res groups); scatter at 8-aligned channel
        # rows and the 128-aligned interior lane offset (full-tile stores). ----
        for (c_g, t_idx, off_g), x_ref in zip(groups_meta, x_refs):
            v = x_ref[0]                                          # (bs*c_g, n_in)
            if t_idx >= 0:
                v = jnp.dot(v, t_refs[t_idx][...],
                            preferred_element_type=jnp.float32)   # (bs*c_g, hw)
            for b in range(bs):
                r0 = b * c_in_pad + off_g
                xpad_ref[r0:r0 + c_g, pad:pad + hw] = v[b * c_g:(b + 1) * c_g, :]

        # ---- Stage 2: 3x3 SAME conv as 9 shifted (static lane offset) slices
        # of the halo buffer, column-masked where the tap leaves the row,
        # accumulated with small MXU matmuls; then folded-BN shift + ReLU. ----
        ml = jnp.broadcast_to(mask_ref[0:1, :], (rows, hw))   # x-1 in range
        mr = jnp.broadcast_to(mask_ref[1:2, :], (rows, hw))   # x+1 in range
        accs = [jnp.zeros((c_out, hw), jnp.float32) for _ in range(bs)]
        for dy in range(3):
            for dx in range(3):
                start = pad + (dy - 1) * W + (dx - 1)
                tapped = xpad_ref[:, start:start + hw]         # (rows, hw)
                if dx == 0:
                    tapped = tapped * ml
                elif dx == 2:
                    tapped = tapped * mr
                w_tap = w2_ref[dy * 3 + dx]                    # (c_out, c_in_pad)
                for b in range(bs):
                    accs[b] = accs[b] + jnp.dot(
                        w_tap, tapped[b * c_in_pad:(b + 1) * c_in_pad, :],
                        preferred_element_type=jnp.float32)
        shift = shift_ref[...]                                 # (c_out, 1)
        for b in range(bs):
            o_ref[0, b * c_out:(b + 1) * c_out, :] = jnp.maximum(accs[b] + shift, 0.0)

    return kernel


def _batches_per_step(batch):
    """v7x-class chips have 2 TensorCores that split a 'parallel' grid axis, so
    keep one batch per grid step there; single-TC chips (v5e/v6e) fold the
    whole batch into one step (bigger matmul M, fewer fixed per-step costs)."""
    if batch <= 1:
        return 1
    try:
        kind = jax.devices()[0].device_kind.lower()
    except Exception:
        kind = ""
    return 1 if "v7" in kind else batch


# ----------------------------------------------------------------------------
# Wrapper: mirrors Block.forward
# ----------------------------------------------------------------------------
def block_forward(x, skip, encoder_0, params, skip_pre=(1, 2, 3, 4),
                  skipped=False, has_operator=True):
    """Upsample (bilinear, align_corners=True) the selected skips to x's spatial
    size, concat on channels (+ encoder_0), then apply the operator
    (conv3x3 -> BN -> ReLU candidate op) — fully fused into one Pallas kernel."""
    if not has_operator or skipped:
        return x
    B, _, H, W = map(int, x.shape)
    HW = H * W
    assert W + 1 <= _LANE_PAD, "halo pad must cover one conv row"
    # NOTE: HW being a multiple of 128 keeps every store lane-dense; other HW
    # values are still correct (masked partial stores on the last lane tile).

    aligned_skip = [x] + list(skip)
    use = [aligned_skip[i] for i in sorted(set(skip_pre))]
    if encoder_0 is not None:
        use.append(encoder_0)

    # Channel range each tensor occupies in the ORIGINAL concat order.
    sizes = [int(a.shape[1]) for a in use]
    ch_starts = np.concatenate([[0], np.cumsum(sizes)])
    c_in = int(ch_starts[-1])

    # Group tensors by spatial size.  Full-resolution tensors need no upsample
    # matrix; each group is one kernel input / one stage-1 matmul, placed at an
    # 8-aligned channel offset.  The channel permutation is folded into w2.
    order, members = [], {}
    for idx, a in enumerate(use):
        key = (int(a.shape[2]), int(a.shape[3]))
        if key not in members:
            members[key] = []
            order.append(key)
        members[key].append(idx)

    t_mats, groups_meta, group_arrays, group_cols = [], [], [], []
    off = 0
    for key in order:
        hin, win = key
        idxs = members[key]
        parts = [use[m].reshape(B, sizes[m], hin * win) for m in idxs]
        garr = parts[0] if len(parts) == 1 else jnp.concatenate(parts, axis=1)
        c_g = int(garr.shape[1])
        if key == (H, W):
            t_idx = -1
        else:
            t_idx = len(t_mats)
            Ah = bilinear_matrix_np(H, hin)
            Aw = bilinear_matrix_np(W, win)
            t_mats.append(jnp.asarray(
                np.einsum("yi,xj->ijyx", Ah, Aw).reshape(hin * win, HW)))
        groups_meta.append((c_g, t_idx, off))
        group_arrays.append(garr)
        cols = []
        for m in idxs:
            cols.extend(range(int(ch_starts[m]), int(ch_starts[m + 1])))
        group_cols.append(np.asarray(cols, np.int32))
        off += _round_up8(c_g)
    c_in_pad = off

    # TODO(synk): the real operator is a NAS mixed-op (conv_blocks_all candidate
    # ops weighted by architecture params); a single conv3x3+BN+ReLU
    # (ResConvLayer-style) candidate is implemented as the deterministic operator.
    w_hwio = params["w"]                              # (3, 3, c_in, c_out)
    c_out = int(w_hwio.shape[-1])
    scale = params["scale"].astype(jnp.float32)
    w9 = jnp.transpose(w_hwio.reshape(9, c_in, c_out), (0, 2, 1))   # (9,c_out,c_in)
    w9 = w9 * scale[None, :, None]                    # fold BN scale into weights
    w2 = jnp.zeros((9, c_out, c_in_pad), jnp.float32)
    for (c_g, _, off_g), cols in zip(groups_meta, group_cols):
        w2 = w2.at[:, :, off_g:off_g + c_g].set(w9[:, :, cols])
    shift2 = params["shift"].reshape(c_out, 1).astype(jnp.float32)

    # Per-output-column validity masks for the dx=0 / dx=2 conv taps.
    xcoord = np.arange(HW, dtype=np.int64) % W
    colmask = jnp.asarray(
        np.stack([(xcoord >= 1), (xcoord <= W - 2)]).astype(np.float32))   # (2, HW)

    bs = _batches_per_step(B)          # batches folded into one grid step
    G = B // bs
    flat_inputs = [a.reshape(G, bs * int(a.shape[1]), int(a.shape[2]))
                   for a in group_arrays]

    kernel = _make_block_kernel(tuple(groups_meta), len(t_mats),
                                c_in_pad, c_out, H, W, bs)

    in_specs = (
        [pl.BlockSpec((1, int(a.shape[1]), int(a.shape[2])), lambda g: (g, 0, 0))
         for a in flat_inputs]
        + [pl.BlockSpec(tuple(int(d) for d in t.shape), lambda g: (0, 0))
           for t in t_mats]
        + [pl.BlockSpec((9, c_out, c_in_pad), lambda g: (0, 0, 0)),
           pl.BlockSpec((c_out, 1), lambda g: (0, 0)),
           pl.BlockSpec((2, HW), lambda g: (0, 0))]
    )
    out_spec = pl.BlockSpec((1, bs * c_out, HW), lambda g: (g, 0, 0))

    flops = 2 * B * (sum(int(a.shape[1]) * int(a.shape[2]) * HW
                         for a, (_, t_idx, _) in zip(group_arrays, groups_meta)
                         if t_idx >= 0)
                     + 9 * c_out * c_in_pad * HW)
    bytes_accessed = 4 * (sum(int(np.prod(a.shape)) for a in flat_inputs)
                          + sum(int(np.prod(t.shape)) for t in t_mats)
                          + 9 * c_out * c_in_pad + c_out + 2 * HW
                          + B * c_out * HW)

    out = pl.pallas_call(
        kernel,
        out_shape=jax.ShapeDtypeStruct((G, bs * c_out, HW), jnp.float32),
        grid_spec=pltpu.PrefetchScalarGridSpec(
            num_scalar_prefetch=0,
            grid=(G,),
            in_specs=in_specs,
            out_specs=out_spec,
            scratch_shapes=[pltpu.VMEM(
                (bs * c_in_pad, _LANE_PAD + HW + _LANE_PAD), jnp.float32)],
        ),
        compiler_params=pltpu.CompilerParams(
            dimension_semantics=("parallel",),
            vmem_limit_bytes=32 * 1024 * 1024,
        ),
        cost_estimate=pl.CostEstimate(flops=flops, transcendentals=0,
                                      bytes_accessed=bytes_accessed),
    )(*flat_inputs, *t_mats, w2, shift2, colmask)

    return out.reshape(B, c_out, H, W)


# ----------------------------------------------------------------------------
# Pure-JAX reference (for correctness check)
# ----------------------------------------------------------------------------
def ref_upsample(x_nchw, out_h, out_w):
    B, C, Hin, Win = x_nchw.shape
    if (Hin, Win) == (out_h, out_w):
        return x_nchw
    Ah = jnp.asarray(bilinear_matrix_np(out_h, Hin))
    Aw = jnp.asarray(bilinear_matrix_np(out_w, Win))
    return jnp.einsum("oh,bchw,qw->bcoq", Ah, x_nchw, Aw)


def ref_forward(x, skip, encoder_0, params, skip_pre=(1, 2, 3, 4)):
    _, _, H, W = x.shape
    aligned_skip = [x] + list(skip)
    use = [ref_upsample(aligned_skip[i], H, W) for i in sorted(set(skip_pre))]
    if encoder_0 is not None:
        use.append(encoder_0)
    xcat = jnp.concatenate(use, axis=1)
    x_nhwc = jnp.transpose(xcat, (0, 2, 3, 1))
    y = lax.conv_general_dilated(
        x_nhwc, params["w"], window_strides=(1, 1), padding="SAME",
        dimension_numbers=("NHWC", "HWIO", "NHWC"))
    y = y * params["scale"][None, None, None, :] + params["shift"][None, None, None, :]
    y = jnp.maximum(y, 0.0)
    return jnp.transpose(y, (0, 3, 1, 2))


# ----------------------------------------------------------------------------
if __name__ == "__main__":
    key = jax.random.PRNGKey(0)
    ks = jax.random.split(key, 12)
    B = 2

    # Inputs (NCHW, like the PyTorch module)
    x = jax.random.normal(ks[0], (B, 4, 16, 16), jnp.float32)
    skip = [
        jax.random.normal(ks[1], (B, 4, 16, 16), jnp.float32),
        jax.random.normal(ks[2], (B, 8, 8, 8), jnp.float32),
        jax.random.normal(ks[3], (B, 8, 4, 4), jnp.float32),
        jax.random.normal(ks[4], (B, 16, 2, 2), jnp.float32),
    ]
    encoder_0 = jax.random.normal(ks[5], (B, 4, 16, 16), jnp.float32)

    # Operator parameters (deterministic init): conv3x3 + folded BatchNorm + ReLU
    cin = 4 + 8 + 8 + 16 + 4      # channels after concat of skips + encoder_0
    cout = 8                      # Block's out_channel
    w = jax.random.normal(ks[6], (3, 3, cin, cout), jnp.float32) * 0.05
    gamma = 1.0 + 0.1 * jax.random.normal(ks[7], (cout,), jnp.float32)
    beta = 0.1 * jax.random.normal(ks[8], (cout,), jnp.float32)
    mean = 0.1 * jax.random.normal(ks[9], (cout,), jnp.float32)
    var = jax.nn.softplus(jax.random.normal(ks[10], (cout,), jnp.float32)) + 0.5
    eps = 1e-5
    scale = gamma / jnp.sqrt(var + eps)
    shift = beta - mean * scale
    params = {"w": w, "scale": scale, "shift": shift}

    out = block_forward(x, skip, encoder_0, params)
    out = jax.block_until_ready(out)

    ref = jax.block_until_ready(ref_forward(x, skip, encoder_0, params))
    np.testing.assert_allclose(np.asarray(out), np.asarray(ref), rtol=2e-4, atol=2e-4)

    print("KERNEL_OK")
</pallas_src>

<mosaic_0001>
module attributes {stable_mosaic.version = 11 : i64} {
  func.func @kernel(%arg0: i32, %arg1: memref<1x16x256xf32, #tpu.memory_space<vmem>>, %arg2: memref<1x16x64xf32, #tpu.memory_space<vmem>>, %arg3: memref<1x16x16xf32, #tpu.memory_space<vmem>>, %arg4: memref<1x32x4xf32, #tpu.memory_space<vmem>>, %arg5: memref<64x256xf32, #tpu.memory_space<vmem>>, %arg6: memref<16x256xf32, #tpu.memory_space<vmem>>, %arg7: memref<4x256xf32, #tpu.memory_space<vmem>>, %arg8: memref<9x8x40xf32, #tpu.memory_space<vmem>>, %arg9: memref<8x1xf32, #tpu.memory_space<vmem>>, %arg10: memref<2x256xf32, #tpu.memory_space<vmem>>, %arg11: memref<1x16x256xf32, #tpu.memory_space<vmem>>, %arg12: memref<80x512xf32, #tpu.memory_space<vmem>>) attributes {dimension_semantics = [#tpu.dimension_semantics<parallel>], iteration_bounds = array<i64: 1>, scalar_prefetch = 0 : i64, scratch_operands = 1 : i64, tpu.core_type = #tpu.core_type<tc>, window_params = [{transform_indices = @transform_0, window_bounds = array<i64: 1, 16, 256>}, {transform_indices = @transform_1, window_bounds = array<i64: 1, 16, 64>}, {transform_indices = @transform_2, window_bounds = array<i64: 1, 16, 16>}, {transform_indices = @transform_3, window_bounds = array<i64: 1, 32, 4>}, {pipeline_mode = #tpu.pipeline_mode<synchronous>, transform_indices = @transform_4, window_bounds = array<i64: 64, 256>}, {pipeline_mode = #tpu.pipeline_mode<synchronous>, transform_indices = @transform_5, window_bounds = array<i64: 16, 256>}, {pipeline_mode = #tpu.pipeline_mode<synchronous>, transform_indices = @transform_6, window_bounds = array<i64: 4, 256>}, {pipeline_mode = #tpu.pipeline_mode<synchronous>, transform_indices = @transform_7, window_bounds = array<i64: 9, 8, 40>}, {pipeline_mode = #tpu.pipeline_mode<synchronous>, transform_indices = @transform_8, window_bounds = array<i64: 8, 1>}, {pipeline_mode = #tpu.pipeline_mode<synchronous>, transform_indices = @transform_9, window_bounds = array<i64: 2, 256>}, {transform_indices = @transform_10, window_bounds = array<i64: 1, 16, 256>}]} {
    %cst = arith.constant 0.000000e+00 : f32
    %0 = vector.broadcast %cst : f32 to vector<80x512xf32>
    %c0 = arith.constant 0 : index
    %c0_0 = arith.constant 0 : index
    %1 = vector.load %arg12[%c0, %c0_0] : memref<80x512xf32, #tpu.memory_space<vmem>>, vector<80x512xf32>
    tpu.vector_store %arg12[%c0, %c0_0], %0 {strides = array<i32>} : memref<80x512xf32, #tpu.memory_space<vmem>>, vector<80x512xf32>,
    %c0_1 = arith.constant 0 : index
    %c0_2 = arith.constant 0 : index
    %c0_3 = arith.constant 0 : index
    %2 = vector.load %arg1[%c0_1, %c0_2, %c0_3] : memref<1x16x256xf32, #tpu.memory_space<vmem>>, vector<1x16x256xf32>
    %3 = vector.shape_cast %2 : vector<1x16x256xf32> to vector<16x256xf32>
    %4 = vector.extract_strided_slice %3 {offsets = [0, 0], sizes = [8, 256], strides = [1, 1]} : vector<16x256xf32> to vector<8x256xf32>
    %c0_4 = arith.constant 0 : index
    %c128 = arith.constant 128 : index
    %5 = vector.load %arg12[%c0_4, %c128] : memref<80x512xf32, #tpu.memory_space<vmem>>, vector<8x256xf32>
    tpu.vector_store %arg12[%c0_4, %c128], %4 {strides = array<i32>} : memref<80x512xf32, #tpu.memory_space<vmem>>, vector<8x256xf32>,
    %6 = vector.extract_strided_slice %3 {offsets = [8, 0], sizes = [8, 256], strides = [1, 1]} : vector<16x256xf32> to vector<8x256xf32>
    %c40 = arith.constant 40 : index
    %c128_5 = arith.constant 128 : index
    %7 = vector.load %arg12[%c40, %c128_5] : memref<80x512xf32, #tpu.memory_space<vmem>>, vector<8x256xf32>
    tpu.vector_store %arg12[%c40, %c128_5], %6 {strides = array<i32>} : memref<80x512xf32, #tpu.memory_space<vmem>>, vector<8x256xf32>,
    %c0_6 = arith.constant 0 : index
    %c0_7 = arith.constant 0 : index
    %c0_8 = arith.constant 0 : index
    %8 = vector.load %arg2[%c0_6, %c0_7, %c0_8] : memref<1x16x64xf32, #tpu.memory_space<vmem>>, vector<1x16x64xf32>
    %9 = vector.shape_cast %8 : vector<1x16x64xf32> to vector<16x64xf32>
    %c0_9 = arith.constant 0 : index
    %c0_10 = arith.constant 0 : index
    %10 = vector.load %arg5[%c0_9, %c0_10] : memref<64x256xf32, #tpu.memory_space<vmem>>, vector<64x256xf32>
    %cst_11 = arith.constant dense<0.000000e+00> : vector<16x256xf32>
    %11 = tpu.matmul %9, %10, %cst_11 {dimension_numbers = #tpu.dot_dimension_numbers<[1], [0], [0], [1], [0, 0, 1, 1], [], []>} : vector<16x64xf32>, vector<64x256xf32>, vector<16x256xf32> -> vector<16x256xf32>
    %12 = vector.extract_strided_slice %11 {offsets = [0, 0], sizes = [8, 256], strides = [1, 1]} : vector<16x256xf32> to vector<8x256xf32>
    %c8 = arith.constant 8 : index
    %c128_12 = arith.constant 128 : index
    %13 = vector.load %arg12[%c8, %c128_12] : memref<80x512xf32, #tpu.memory_space<vmem>>, vector<8x256xf32>
    tpu.vector_store %arg12[%c8, %c128_12], %12 {strides = array<i32>} : memref<80x512xf32, #tpu.memory_space<vmem>>, vector<8x256xf32>,
    %14 = vector.extract_strided_slice %11 {offsets = [8, 0], sizes = [8, 256], strides = [1, 1]} : vector<16x256xf32> to vector<8x256xf32>
    %c48 = arith.constant 48 : index
    %c128_13 = arith.constant 128 : index
    %15 = vector.load %arg12[%c48, %c128_13] : memref<80x512xf32, #tpu.memory_space<vmem>>, vector<8x256xf32>
    tpu.vector_store %arg12[%c48, %c128_13], %14 {strides = array<i32>} : memref<80x512xf32, #tpu.memory_space<vmem>>, vector<8x256xf32>,
    %c0_14 = arith.constant 0 : index
    %c0_15 = arith.constant 0 : index
    %c0_16 = arith.constant 0 : index
    %16 = vector.load %arg3[%c0_14, %c0_15, %c0_16] : memref<1x16x16xf32, #tpu.memory_space<vmem>>, vector<1x16x16xf32>
    %17 = vector.shape_cast %16 : vector<1x16x16xf32> to vector<16x16xf32>
    %c0_17 = arith.constant 0 : index
    %c0_18 = arith.constant 0 : index
    %18 = vector.load %arg6[%c0_17, %c0_18] : memref<16x256xf32, #tpu.memory_space<vmem>>, vector<16x256xf32>
    %cst_19 = arith.constant dense<0.000000e+00> : vector<16x256xf32>
    %19 = tpu.matmul %17, %18, %cst_19 {dimension_numbers = #tpu.dot_dimension_numbers<[1], [0], [0], [1], [0, 0, 1, 1], [], []>} : vector<16x16xf32>, vector<16x256xf32>, vector<16x256xf32> -> vector<16x256xf32>
    %20 = vector.extract_strided_slice %19 {offsets = [0, 0], sizes = [8, 256], strides = [1, 1]} : vector<16x256xf32> to vector<8x256xf32>
    %c16 = arith.constant 16 : index
    %c128_20 = arith.constant 128 : index
    %21 = vector.load %arg12[%c16, %c128_20] : memref<80x512xf32, #tpu.memory_space<vmem>>, vector<8x256xf32>
    tpu.vector_store %arg12[%c16, %c128_20], %20 {strides = array<i32>} : memref<80x512xf32, #tpu.memory_space<vmem>>, vector<8x256xf32>,
    %22 = vector.extract_strided_slice %19 {offsets = [8, 0], sizes = [8, 256], strides = [1, 1]} : vector<16x256xf32> to vector<8x256xf32>
    %c56 = arith.constant 56 : index
    %c128_21 = arith.constant 128 : index
    %23 = vector.load %arg12[%c56, %c128_21] : memref<80x512xf32, #tpu.memory_space<vmem>>, vector<8x256xf32>
    tpu.vector_store %arg12[%c56, %c128_21], %22 {strides = array<i32>} : memref<80x512xf32, #tpu.memory_space<vmem>>, vector<8x256xf32>,
    %c0_22 = arith.constant 0 : index
    %c0_23 = arith.constant 0 : index
    %c0_24 = arith.constant 0 : index
    %24 = vector.load %arg4[%c0_22, %c0_23, %c0_24] : memref<1x32x4xf32, #tpu.memory_space<vmem>>, vector<1x32x4xf32>
    %25 = vector.shape_cast %24 : vector<1x32x4xf32> to vector<32x4xf32>
    %c0_25 = arith.constant 0 : index
    %c0_26 = arith.constant 0 : index
    %26 = vector.load %arg7[%c0_25, %c0_26] : memref<4x256xf32, #tpu.memory_space<vmem>>, vector<4x256xf32>
    %cst_27 = arith.constant dense<0.000000e+00> : vector<32x256xf32>
    %27 = tpu.matmul %25, %26, %cst_27 {dimension_numbers = #tpu.dot_dimension_numbers<[1], [0], [0], [1], [0, 0, 1, 1], [], []>} : vector<32x4xf32>, vector<4x256xf32>, vector<32x256xf32> -> vector<32x256xf32>
    %28 = vector.extract_strided_slice %27 {offsets = [0, 0], sizes = [16, 256], strides = [1, 1]} : vector<32x256xf32> to vector<16x256xf32>
    %c24 = arith.constant 24 : index
    %c128_28 = arith.constant 128 : index
    %29 = vector.load %arg12[%c24, %c128_28] : memref<80x512xf32, #tpu.memory_space<vmem>>, vector<16x256xf32>
    tpu.vector_store %arg12[%c24, %c128_28], %28 {strides = array<i32>} : memref<80x512xf32, #tpu.memory_space<vmem>>, vector<16x256xf32>,
    %30 = vector.extract_strided_slice %27 {offsets = [16, 0], sizes = [16, 256], strides = [1, 1]} : vector<32x256xf32> to vector<16x256xf32>
    %c64 = arith.constant 64 : index
    %c128_29 = arith.constant 128 : index
    %31 = vector.load %arg12[%c64, %c128_29] : memref<80x512xf32, #tpu.memory_space<vmem>>, vector<16x256xf32>
    tpu.vector_store %arg12[%c64, %c128_29], %30 {strides = array<i32>} : memref<80x512xf32, #tpu.memory_space<vmem>>, vector<16x256xf32>,
    %c0_30 = arith.constant 0 : index
    %c0_31 = arith.constant 0 : index
    %32 = vector.load %arg10[%c0_30, %c0_31] : memref<2x256xf32, #tpu.memory_space<vmem>>, vector<1x256xf32>
    %33 = vector.shape_cast %32 : vector<1x256xf32> to vector<1x256xf32>
    %34 = vector.broadcast %33 : vector<1x256xf32> to vector<80x256xf32>
    %c1 = arith.constant 1 : index
    %c0_32 = arith.constant 0 : index
    %35 = vector.load %arg10[%c1, %c0_32] : memref<2x256xf32, #tpu.memory_space<vmem>>, vector<1x256xf32>
    %36 = vector.shape_cast %35 : vector<1x256xf32> to vector<1x256xf32>
    %37 = vector.broadcast %36 : vector<1x256xf32> to vector<80x256xf32>
    %cst_33 = arith.constant 0.000000e+00 : f32
    %38 = vector.broadcast %cst_33 : f32 to vector<8x256xf32>
    %cst_34 = arith.constant 0.000000e+00 : f32
    %39 = vector.broadcast %cst_34 : f32 to vector<8x256xf32>
    %c0_35 = arith.constant 0 : index
    %c111 = arith.constant 111 : index
    %40 = vector.load %arg12[%c0_35, %c111] : memref<80x512xf32, #tpu.memory_space<vmem>>, vector<80x256xf32>
    %41 = arith.mulf %40, %34 : vector<80x256xf32>
    %c0_36 = arith.constant 0 : index
    %c0_37 = arith.constant 0 : index
    %c0_38 = arith.constant 0 : index
    %42 = vector.load %arg8[%c0_36, %c0_37, %c0_38] : memref<9x8x40xf32, #tpu.memory_space<vmem>>, vector<1x8x40xf32>
    %43 = vector.shape_cast %42 : vector<1x8x40xf32> to vector<8x40xf32>
    %44 = vector.extract_strided_slice %41 {offsets = [0, 0], sizes = [40, 256], strides = [1, 1]} : vector<80x256xf32> to vector<40x256xf32>
    %cst_39 = arith.constant dense<0.000000e+00> : vector<8x256xf32>
    %45 = tpu.matmul %43, %44, %cst_39 {dimension_numbers = #tpu.dot_dimension_numbers<[1], [0], [0], [1], [0, 0, 1, 1], [], []>} : vector<8x40xf32>, vector<40x256xf32>, vector<8x256xf32> -> vector<8x256xf32>
    %46 = arith.addf %38, %45 : vector<8x256xf32>
    %47 = vector.extract_strided_slice %41 {offsets = [40, 0], sizes = [40, 256], strides = [1, 1]} : vector<80x256xf32> to vector<40x256xf32>
    %cst_40 = arith.constant dense<0.000000e+00> : vector<8x256xf32>
    %48 = tpu.matmul %43, %47, %cst_40 {dimension_numbers = #tpu.dot_dimension_numbers<[1], [0], [0], [1], [0, 0, 1, 1], [], []>} : vector<8x40xf32>, vector<40x256xf32>, vector<8x256xf32> -> vector<8x256xf32>
    %49 = arith.addf %39, %48 : vector<8x256xf32>
    %c0_41 = arith.constant 0 : index
    %c112 = arith.constant 112 : index
    %50 = vector.load %arg12[%c0_41, %c112] : memref<80x512xf32, #tpu.memory_space<vmem>>, vector<80x256xf32>
    %c1_42 = arith.constant 1 : index
    %c0_43 = arith.constant 0 : index
    %c0_44 = arith.constant 0 : index
    %51 = vector.load %arg8[%c1_42, %c0_43, %c0_44] : memref<9x8x40xf32, #tpu.memory_space<vmem>>, vector<1x8x40xf32>
    %52 = vector.shape_cast %51 : vector<1x8x40xf32> to vector<8x40xf32>
    %53 = vector.extract_strided_slice %50 {offsets = [0, 0], sizes = [40, 256], strides = [1, 1]} : vector<80x256xf32> to vector<40x256xf32>
    %cst_45 = arith.constant dense<0.000000e+00> : vector<8x256xf32>
    %54 = tpu.matmul %52, %53, %cst_45 {dimension_numbers = #tpu.dot_dimension_numbers<[1], [0], [0], [1], [0, 0, 1, 1], [], []>} : vector<8x40xf32>, vector<40x256xf32>, vector<8x256xf32> -> vector<8x256xf32>
    %55 = arith.addf %46, %54 : vector<8x256xf32>
    %56 = vector.extract_strided_slice %50 {offsets = [40, 0], sizes = [40, 256], strides = [1, 1]} : vector<80x256xf32> to vector<40x256xf32>
    %cst_46 = arith.constant dense<0.000000e+00> : vector<8x256xf32>
    %57 = tpu.matmul %52, %56, %cst_46 {dimension_numbers = #tpu.dot_dimension_numbers<[1], [0], [0], [1], [0, 0, 1, 1], [], []>} : vector<8x40xf32>, vector<40x256xf32>, vector<8x256xf32> -> vector<8x256xf32>
    %58 = arith.addf %49, %57 : vector<8x256xf32>
    %c0_47 = arith.constant 0 : index
    %c113 = arith.constant 113 : index
    %59 = vector.load %arg12[%c0_47, %c113] : memref<80x512xf32, #tpu.memory_space<vmem>>, vector<80x256xf32>
    %60 = arith.mulf %59, %37 : vector<80x256xf32>
    %c2 = arith.constant 2 : index
    %c0_48 = arith.constant 0 : index
    %c0_49 = arith.constant 0 : index
    %61 = vector.load %arg8[%c2, %c0_48, %c0_49] : memref<9x8x40xf32, #tpu.memory_space<vmem>>, vector<1x8x40xf32>
    %62 = vector.shape_cast %61 : vector<1x8x40xf32> to vector<8x40xf32>
    %63 = vector.extract_strided_slice %60 {offsets = [0, 0], sizes = [40, 256], strides = [1, 1]} : vector<80x256xf32> to vector<40x256xf32>
    %cst_50 = arith.constant dense<0.000000e+00> : vector<8x256xf32>
    %64 = tpu.matmul %62, %63, %cst_50 {dimension_numbers = #tpu.dot_dimension_numbers<[1], [0], [0], [1], [0, 0, 1, 1], [], []>} : vector<8x40xf32>, vector<40x256xf32>, vector<8x256xf32> -> vector<8x256xf32>
    %65 = arith.addf %55, %64 : vector<8x256xf32>
    %66 = vector.extract_strided_slice %60 {offsets = [40, 0], sizes = [40, 256], strides = [1, 1]} : vector<80x256xf32> to vector<40x256xf32>
    %cst_51 = arith.constant dense<0.000000e+00> : vector<8x256xf32>
    %67 = tpu.matmul %62, %66, %cst_51 {dimension_numbers = #tpu.dot_dimension_numbers<[1], [0], [0], [1], [0, 0, 1, 1], [], []>} : vector<8x40xf32>, vector<40x256xf32>, vector<8x256xf32> -> vector<8x256xf32>
    %68 = arith.addf %58, %67 : vector<8x256xf32>
    %c0_52 = arith.constant 0 : index
    %c127 = arith.constant 127 : index
    %69 = vector.load %arg12[%c0_52, %c127] : memref<80x512xf32, #tpu.memory_space<vmem>>, vector<80x256xf32>
    %70 = arith.mulf %69, %34 : vector<80x256xf32>
    %c3 = arith.constant 3 : index
    %c0_53 = arith.constant 0 : index
    %c0_54 = arith.constant 0 : index
    %71 = vector.load %arg8[%c3, %c0_53, %c0_54] : memref<9x8x40xf32, #tpu.memory_space<vmem>>, vector<1x8x40xf32>
    %72 = vector.shape_cast %71 : vector<1x8x40xf32> to vector<8x40xf32>
    %73 = vector.extract_strided_slice %70 {offsets = [0, 0], sizes = [40, 256], strides = [1, 1]} : vector<80x256xf32> to vector<40x256xf32>
    %cst_55 = arith.constant dense<0.000000e+00> : vector<8x256xf32>
    %74 = tpu.matmul %72, %73, %cst_55 {dimension_numbers = #tpu.dot_dimension_numbers<[1], [0], [0], [1], [0, 0, 1, 1], [], []>} : vector<8x40xf32>, vector<40x256xf32>, vector<8x256xf32> -> vector<8x256xf32>
    %75 = arith.addf %65, %74 : vector<8x256xf32>
    %76 = vector.extract_strided_slice %70 {offsets = [40, 0], sizes = [40, 256], strides = [1, 1]} : vector<80x256xf32> to vector<40x256xf32>
    %cst_56 = arith.constant dense<0.000000e+00> : vector<8x256xf32>
    %77 = tpu.matmul %72, %76, %cst_56 {dimension_numbers = #tpu.dot_dimension_numbers<[1], [0], [0], [1], [0, 0, 1, 1], [], []>} : vector<8x40xf32>, vector<40x256xf32>, vector<8x256xf32> -> vector<8x256xf32>
    %78 = arith.addf %68, %77 : vector<8x256xf32>
    %c0_57 = arith.constant 0 : index
    %c128_58 = arith.constant 128 : index
    %79 = vector.load %arg12[%c0_57, %c128_58] : memref<80x512xf32, #tpu.memory_space<vmem>>, vector<80x256xf32>
    %c4 = arith.constant 4 : index
    %c0_59 = arith.constant 0 : index
    %c0_60 = arith.constant 0 : index
    %80 = vector.load %arg8[%c4, %c0_59, %c0_60] : memref<9x8x40xf32, #tpu.memory_space<vmem>>, vector<1x8x40xf32>
    %81 = vector.shape_cast %80 : vector<1x8x40xf32> to vector<8x40xf32>
    %82 = vector.extract_strided_slice %79 {offsets = [0, 0], sizes = [40, 256], strides = [1, 1]} : vector<80x256xf32> to vector<40x256xf32>
    %cst_61 = arith.constant dense<0.000000e+00> : vector<8x256xf32>
    %83 = tpu.matmul %81, %82, %cst_61 {dimension_numbers = #tpu.dot_dimension_numbers<[1], [0], [0], [1], [0, 0, 1, 1], [], []>} : vector<8x40xf32>, vector<40x256xf32>, vector<8x256xf32> -> vector<8x256xf32>
    %84 = arith.addf %75, %83 : vector<8x256xf32>
    %85 = vector.extract_strided_slice %79 {offsets = [40, 0], sizes = [40, 256], strides = [1, 1]} : vector<80x256xf32> to vector<40x256xf32>
    %cst_62 = arith.constant dense<0.000000e+00> : vector<8x256xf32>
    %86 = tpu.matmul %81, %85, %cst_62 {dimension_numbers = #tpu.dot_dimension_numbers<[1], [0], [0], [1], [0, 0, 1, 1], [], []>} : vector<8x40xf32>, vector<40x256xf32>, vector<8x256xf32> -> vector<8x256xf32>
    %87 = arith.addf %78, %86 : vector<8x256xf32>
    %c0_63 = arith.constant 0 : index
    %c129 = arith.constant 129 : index
    %88 = vector.load %arg12[%c0_63, %c129] : memref<80x512xf32, #tpu.memory_space<vmem>>, vector<80x256xf32>
    %89 = arith.mulf %88, %37 : vector<80x256xf32>
    %c5 = arith.constant 5 : index
    %c0_64 = arith.constant 0 : index
    %c0_65 = arith.constant 0 : index
    %90 = vector.load %arg8[%c5, %c0_64, %c0_65] : memref<9x8x40xf32, #tpu.memory_space<vmem>>, vector<1x8x40xf32>
    %91 = vector.shape_cast %90 : vector<1x8x40xf32> to vector<8x40xf32>
    %92 = vector.extract_strided_slice %89 {offsets = [0, 0], sizes = [40, 256], strides = [1, 1]} : vector<80x256xf32> to vector<40x256xf32>
    %cst_66 = arith.constant dense<0.000000e+00> : vector<8x256xf32>
    %93 = tpu.matmul %91, %92, %cst_66 {dimension_numbers = #tpu.dot_dimension_numbers<[1], [0], [0], [1], [0, 0, 1, 1], [], []>} : vector<8x40xf32>, vector<40x256xf32>, vector<8x256xf32> -> vector<8x256xf32>
    %94 = arith.addf %84, %93 : vector<8x256xf32>
    %95 = vector.extract_strided_slice %89 {offsets = [40, 0], sizes = [40, 256], strides = [1, 1]} : vector<80x256xf32> to vector<40x256xf32>
    %cst_67 = arith.constant dense<0.000000e+00> : vector<8x256xf32>
    %96 = tpu.matmul %91, %95, %cst_67 {dimension_numbers = #tpu.dot_dimension_numbers<[1], [0], [0], [1], [0, 0, 1, 1], [], []>} : vector<8x40xf32>, vector<40x256xf32>, vector<8x256xf32> -> vector<8x256xf32>
    %97 = arith.addf %87, %96 : vector<8x256xf32>
    %c0_68 = arith.constant 0 : index
    %c143 = arith.constant 143 : index
    %98 = vector.load %arg12[%c0_68, %c143] : memref<80x512xf32, #tpu.memory_space<vmem>>, vector<80x256xf32>
    %99 = arith.mulf %98, %34 : vector<80x256xf32>
    %c6 = arith.constant 6 : index
    %c0_69 = arith.constant 0 : index
    %c0_70 = arith.constant 0 : index
    %100 = vector.load %arg8[%c6, %c0_69, %c0_70] : memref<9x8x40xf32, #tpu.memory_space<vmem>>, vector<1x8x40xf32>
    %101 = vector.shape_cast %100 : vector<1x8x40xf32> to vector<8x40xf32>
    %102 = vector.extract_strided_slice %99 {offsets = [0, 0], sizes = [40, 256], strides = [1, 1]} : vector<80x256xf32> to vector<40x256xf32>
    %cst_71 = arith.constant dense<0.000000e+00> : vector<8x256xf32>
    %103 = tpu.matmul %101, %102, %cst_71 {dimension_numbers = #tpu.dot_dimension_numbers<[1], [0], [0], [1], [0, 0, 1, 1], [], []>} : vector<8x40xf32>, vector<40x256xf32>, vector<8x256xf32> -> vector<8x256xf32>
    %104 = arith.addf %94, %103 : vector<8x256xf32>
    %105 = vector.extract_strided_slice %99 {offsets = [40, 0], sizes = [40, 256], strides = [1, 1]} : vector<80x256xf32> to vector<40x256xf32>
    %cst_72 = arith.constant dense<0.000000e+00> : vector<8x256xf32>
    %106 = tpu.matmul %101, %105, %cst_72 {dimension_numbers = #tpu.dot_dimension_numbers<[1], [0], [0], [1], [0, 0, 1, 1], [], []>} : vector<8x40xf32>, vector<40x256xf32>, vector<8x256xf32> -> vector<8x256xf32>
    %107 = arith.addf %97, %106 : vector<8x256xf32>
    %c0_73 = arith.constant 0 : index
    %c144 = arith.constant 144 : index
    %108 = vector.load %arg12[%c0_73, %c144] : memref<80x512xf32, #tpu.memory_space<vmem>>, vector<80x256xf32>
    %c7 = arith.constant 7 : index
    %c0_74 = arith.constant 0 : index
    %c0_75 = arith.constant 0 : index
    %109 = vector.load %arg8[%c7, %c0_74, %c0_75] : memref<9x8x40xf32, #tpu.memory_space<vmem>>, vector<1x8x40xf32>
    %110 = vector.shape_cast %109 : vector<1x8x40xf32> to vector<8x40xf32>
    %111 = vector.extract_strided_slice %108 {offsets = [0, 0], sizes = [40, 256], strides = [1, 1]} : vector<80x256xf32> to vector<40x256xf32>
    %cst_76 = arith.constant dense<0.000000e+00> : vector<8x256xf32>
    %112 = tpu.matmul %110, %111, %cst_76 {dimension_numbers = #tpu.dot_dimension_numbers<[1], [0], [0], [1], [0, 0, 1, 1], [], []>} : vector<8x40xf32>, vector<40x256xf32>, vector<8x256xf32> -> vector<8x256xf32>
    %113 = arith.addf %104, %112 : vector<8x256xf32>
    %114 = vector.extract_strided_slice %108 {offsets = [40, 0], sizes = [40, 256], strides = [1, 1]} : vector<80x256xf32> to vector<40x256xf32>
    %cst_77 = arith.constant dense<0.000000e+00> : vector<8x256xf32>
    %115 = tpu.matmul %110, %114, %cst_77 {dimension_numbers = #tpu.dot_dimension_numbers<[1], [0], [0], [1], [0, 0, 1, 1], [], []>} : vector<8x40xf32>, vector<40x256xf32>, vector<8x256xf32> -> vector<8x256xf32>
    %116 = arith.addf %107, %115 : vector<8x256xf32>
    %c0_78 = arith.constant 0 : index
    %c145 = arith.constant 145 : index
    %117 = vector.load %arg12[%c0_78, %c145] : memref<80x512xf32, #tpu.memory_space<vmem>>, vector<80x256xf32>
    %118 = arith.mulf %117, %37 : vector<80x256xf32>
    %c8_79 = arith.constant 8 : index
    %c0_80 = arith.constant 0 : index
    %c0_81 = arith.constant 0 : index
    %119 = vector.load %arg8[%c8_79, %c0_80, %c0_81] : memref<9x8x40xf32, #tpu.memory_space<vmem>>, vector<1x8x40xf32>
    %120 = vector.shape_cast %119 : vector<1x8x40xf32> to vector<8x40xf32>
    %121 = vector.extract_strided_slice %118 {offsets = [0, 0], sizes = [40, 256], strides = [1, 1]} : vector<80x256xf32> to vector<40x256xf32>
    %cst_82 = arith.constant dense<0.000000e+00> : vector<8x256xf32>
    %122 = tpu.matmul %120, %121, %cst_82 {dimension_numbers = #tpu.dot_dimension_numbers<[1], [0], [0], [1], [0, 0, 1, 1], [], []>} : vector<8x40xf32>, vector<40x256xf32>, vector<8x256xf32> -> vector<8x256xf32>
    %123 = arith.addf %113, %122 : vector<8x256xf32>
    %124 = vector.extract_strided_slice %118 {offsets = [40, 0], sizes = [40, 256], strides = [1, 1]} : vector<80x256xf32> to vector<40x256xf32>
    %cst_83 = arith.constant dense<0.000000e+00> : vector<8x256xf32>
    %125 = tpu.matmul %120, %124, %cst_83 {dimension_numbers = #tpu.dot_dimension_numbers<[1], [0], [0], [1], [0, 0, 1, 1], [], []>} : vector<8x40xf32>, vector<40x256xf32>, vector<8x256xf32> -> vector<8x256xf32>
    %126 = arith.addf %116, %125 : vector<8x256xf32>
    %c0_84 = arith.constant 0 : index
    %c0_85 = arith.constant 0 : index
    %127 = vector.load %arg9[%c0_84, %c0_85] : memref<8x1xf32, #tpu.memory_space<vmem>>, vector<8x1xf32>
    %128 = vector.broadcast %127 : vector<8x1xf32> to vector<8x256xf32>
    %129 = arith.addf %123, %128 : vector<8x256xf32>
    %cst_86 = arith.constant 0.000000e+00 : f32
    %130 = vector.broadcast %cst_86 : f32 to vector<8x256xf32>
    %131 = arith.maximumf %129, %130 : vector<8x256xf32>
    %c0_87 = arith.constant 0 : index
    %c0_88 = arith.constant 0 : index
    %c0_89 = arith.constant 0 : index
    %132 = vector.load %arg11[%c0_87, %c0_88, %c0_89] : memref<1x16x256xf32, #tpu.memory_space<vmem>>, vector<1x8x256xf32>
    %133 = vector.shape_cast %132 : vector<1x8x256xf32> to vector<8x256xf32>
    %134 = vector.shape_cast %131 : vector<8x256xf32> to vector<1x8x256xf32>
    tpu.vector_store %arg11[%c0_87, %c0_88, %c0_89], %134 {strides = array<i32>} : memref<1x16x256xf32, #tpu.memory_space<vmem>>, vector<1x8x256xf32>,
    %135 = vector.broadcast %127 : vector<8x1xf32> to vector<8x256xf32>
    %136 = arith.addf %126, %135 : vector<8x256xf32>
    %cst_90 = arith.constant 0.000000e+00 : f32
    %137 = vector.broadcast %cst_90 : f32 to vector<8x256xf32>
    %138 = arith.maximumf %136, %137 : vector<8x256xf32>
    %c0_91 = arith.constant 0 : index
    %c8_92 = arith.constant 8 : index
    %c0_93 = arith.constant 0 : index
    %139 = vector.load %arg11[%c0_91, %c8_92, %c0_93] : memref<1x16x256xf32, #tpu.memory_space<vmem>>, vector<1x8x256xf32>
    %140 = vector.shape_cast %139 : vector<1x8x256xf32> to vector<8x256xf32>
    %141 = vector.shape_cast %138 : vector<8x256xf32> to vector<1x8x256xf32>
    tpu.vector_store %arg11[%c0_91, %c8_92, %c0_93], %141 {strides = array<i32>} : memref<1x16x256xf32, #tpu.memory_space<vmem>>, vector<1x8x256xf32>,
    return
  }
  func.func @transform_0(%arg0: i32) -> (i32, i32, i32) {
    %c0_i32 = arith.constant 0 : i32
    %c0_i32_0 = arith.constant 0 : i32
    %c0_i32_1 = arith.constant 0 : i32
    return %arg0, %c0_i32, %c0_i32_0 : i32, i32, i32
  }
  func.func @transform_1(%arg0: i32) -> (i32, i32, i32) {
    %c0_i32 = arith.constant 0 : i32
    %c0_i32_0 = arith.constant 0 : i32
    %c0_i32_1 = arith.constant 0 : i32
    return %arg0, %c0_i32, %c0_i32_0 : i32, i32, i32
  }
  func.func @transform_2(%arg0: i32) -> (i32, i32, i32) {
    %c0_i32 = arith.constant 0 : i32
    %c0_i32_0 = arith.constant 0 : i32
    %c0_i32_1 = arith.constant 0 : i32
    return %arg0, %c0_i32, %c0_i32_0 : i32, i32, i32
  }
  func.func @transform_3(%arg0: i32) -> (i32, i32, i32) {
    %c0_i32 = arith.constant 0 : i32
    %c0_i32_0 = arith.constant 0 : i32
    %c0_i32_1 = arith.constant 0 : i32
    return %arg0, %c0_i32, %c0_i32_0 : i32, i32, i32
  }
  func.func @transform_4(%arg0: i32) -> (i32, i32) {
    %c0_i32 = arith.constant 0 : i32
    %c0_i32_0 = arith.constant 0 : i32
    %c0_i32_1 = arith.constant 0 : i32
    return %c0_i32, %c0_i32_0 : i32, i32
  }
  func.func @transform_5(%arg0: i32) -> (i32, i32) {
    %c0_i32 = arith.constant 0 : i32
    %c0_i32_0 = arith.constant 0 : i32
    %c0_i32_1 = arith.constant 0 : i32
    return %c0_i32, %c0_i32_0 : i32, i32
  }
  func.func @transform_6(%arg0: i32) -> (i32, i32) {
    %c0_i32 = arith.constant 0 : i32
    %c0_i32_0 = arith.constant 0 : i32
    %c0_i32_1 = arith.constant 0 : i32
    return %c0_i32, %c0_i32_0 : i32, i32
  }
  func.func @transform_7(%arg0: i32) -> (i32, i32, i32) {
    %c0_i32 = arith.constant 0 : i32
    %c0_i32_0 = arith.constant 0 : i32
    %c0_i32_1 = arith.constant 0 : i32
    %c0_i32_2 = arith.constant 0 : i32
    return %c0_i32, %c0_i32_0, %c0_i32_1 : i32, i32, i32
  }
  func.func @transform_8(%arg0: i32) -> (i32, i32) {
    %c0_i32 = arith.constant 0 : i32
    %c0_i32_0 = arith.constant 0 : i32
    %c0_i32_1 = arith.constant 0 : i32
    return %c0_i32, %c0_i32_0 : i32, i32
  }
  func.func @transform_9(%arg0: i32) -> (i32, i32) {
    %c0_i32 = arith.constant 0 : i32
    %c0_i32_0 = arith.constant 0 : i32
    %c0_i32_1 = arith.constant 0 : i32
    return %c0_i32, %c0_i32_0 : i32, i32
  }
  func.func @transform_10(%arg0: i32) -> (i32, i32, i32) {
    %c0_i32 = arith.constant 0 : i32
    %c0_i32_0 = arith.constant 0 : i32
    %c0_i32_1 = arith.constant 0 : i32
    return %arg0, %c0_i32, %c0_i32_0 : i32, i32, i32
  }
}

</mosaic_0001>

<bundles_post_ra>
// kernel: tpu_custom_call.1
= control target key start
LH: loop header
LB: loop body
LE: loop exit
PB: predicated region body
PF: predicated region fallthrough
CT: control target
= control target key end

     0   :  { %15 = vsyncpa [#allocation4], 0  ;;  %s5040_s0 = inlined_call_operand.vmem [shape: f32[1,16,256], index: 0, kind: input, shape index: {}]   ;;  %s5041_s1 = inlined_call_operand.hbm [shape: f32[1,16,64], index: 1, kind: input, shape index: {}]   ;;  %s5042_s2 = inlined_call_operand.hbm [shape: f32[1,16,16], index: 2, kind: input, shape index: {}]   ;;  %s5043_s3 = inlined_call_operand.vmem [shape: f32[1,32,4], index: 3, kind: input, shape index: {}]   ;;  %s5044_s4 = inlined_call_operand.hbm [shape: f32[64,256], index: 4, kind: input, shape index: {}]   ;;  %s5045_s5 = inlined_call_operand.hbm [shape: f32[16,256], index: 5, kind: input, shape index: {}]   ;;  %s5046_s6 = inlined_call_operand.vmem [shape: f32[4,256], index: 6, kind: input, shape index: {}]   ;;  %s5047_s7 = inlined_call_operand.hbm [shape: f32[9,8,40], index: 7, kind: input, shape index: {}]   ;;  %s5048_s8 = inlined_call_operand.vmem [shape: f32[8,1], index: 8, kind: input, shape index: {}]   ;;  %s5049_s9 = inlined_call_operand.vmem [shape: f32[2,256], index: 9, kind: input, shape index: {}]   ;;  %s5050_s10 = inlined_call_operand.hbm [shape: f32[1,16,256], index: 10, kind: output, shape index: {}]  }
   0x1   :  { %16 = vsyncpa [#allocation7], 0 }
   0x2   :  { %17 = vsyncpa [#allocation10], 0 }
   0x3   :  { %18 = vsyncpa [#allocation5], 0  ;;  %s38_s15 = sshll.u32 %s5042_s2, 4  ;;  %s3400_s16 = smov [#allocation6]   ;;  %s39_s15 = int_to_ptr.hbm [resolvable:$true] %s38_s15 }
   0x4   :  { %s40_s17 = sshll.u32 %s3400_s16, 4  ;;  %s3401_s18 = smov 128   ;;  %s41_s17 = int_to_ptr.vmem [resolvable:$true] %s40_s17 }
   0x5   :  { %s3402_s19 = smov 8   ;;  %s66_s22 = sshll.u32 %s5045_s5, 4  ;;  %s67_s22 = int_to_ptr.hbm [resolvable:$true] %s66_s22 }
   0x6   :  { %46 = dma.hbm_to_vmem [thread:$0]  %s39_s15, 256, %s41_s17, [#allocation7], %s3401_s18, %s3401_s18, %s3402_s19  }
   0x7   :  { %s3403_s23 = smov [#allocation9]   ;;  %s25_s2 = sshll.u32 %s5041_s1, 4  ;;  %s26_s2 = int_to_ptr.hbm [resolvable:$true] %s25_s2 }
   0x8   :  { %s68_s24 = sshll.u32 %s3403_s23, 4  ;;  %s3404_s27 = smov 256   ;;  %s69_s24 = int_to_ptr.vmem [resolvable:$true] %s68_s24 }
   0x9   :  { %s3405_s28 = smov 16   ;;  %s53_s11 = sshll.u32 %s5044_s4, 4  ;;  %s54_s11 = int_to_ptr.hbm [resolvable:$true] %s53_s11 }
   0xa   :  { %74 = dma.hbm_to_vmem [thread:$0]  %s67_s22, 512, %s69_s24, [#allocation10], %s3404_s27, %s3404_s27, %s3405_s28  }
   0xb   :  { %s3406_s5 = smov [#allocation3]   ;;  %s3407_s1 = smov [#allocation8]  }
   0xc   :  { %s27_s12 = sshll.u32 %s3406_s5, 4  ;;  %s55_s13 = sshll.u32 %s3407_s1, 4  ;;  %s28_s12 = int_to_ptr.vmem [resolvable:$true] %s27_s12  ;;  %s56_s13 = int_to_ptr.vmem [resolvable:$true] %s55_s13 }
   0xd   :  { %33 = dma.hbm_to_vmem [thread:$0]  %s26_s2, 256, %s28_s12, [#allocation4], %s3401_s18, %s3401_s18, %s3402_s19  }
   0xe   :  { %s81_s16 = sshll.u32 %s5047_s7, 4  ;;  %s3408_s4 = smov [#allocation11]   ;;  %s82_s16 = int_to_ptr.hbm [resolvable:$true] %s81_s16 }
   0xf   :  { %61 = dma.hbm_to_vmem [thread:$0]  %s54_s11, 2048, %s56_s13, [#allocation7], %s3404_s27, %s3404_s27, %s3405_s28  }
  0x10   :  { %s83_s17 = sshll.u32 %s3408_s4, 4  ;;  %s84_s17 = int_to_ptr.vmem [resolvable:$true] %s83_s17 }
  0x11   :  { %89 = dma.hbm_to_vmem [thread:$0]  %s82_s16, 1152, %s84_s17, [#allocation10], %s3401_s18, %s3401_s18, %s3402_s19  }
  0x12   :  { %3392 = dma.done.wait [#allocation4], 256  }
  0x13   :  { %3393 = vsyncadd [#allocation4], 4294967040 }
  0x14   :  { %3394 = dma.done.wait [#allocation7], 2304  }
  0x15   :  { %3395 = vsyncadd [#allocation7], 4294964992 }
  0x16   :  { %3396 = dma.done.wait [#allocation10], 1664  }
  0x17   :  { %3397 = vsyncadd [#allocation10], 4294965632  ;;  %v178_v0 = vld [vmem:[#allocation8 + $0x70] sm:$0xff]  ;;  %v179_v1 = vld [vmem:[#allocation8 + $0x78] sm:$0xff]  ;;  %vm243_vm0 = vcmask 130048   ;;  %s3409_s21 = smov 111  }
  0x18   :  { %v241_v2 = vld [vmem:[#allocation9 + $0x10] sm:$0xff]  ;;  %195 = vmatpush.msra.mxu0 %v178_v0  ;;  %218 = vmatpush.msra.mxu1 %v179_v1  ;;  %v242_v3 = vld [vmem:[#allocation9 + $0x18] sm:$0xff]  ;;  %v176_v5 = vld [vmem:[#allocation8 + $0x60] sm:$0xff]  ;;  %v5053_v12 = vmov 0.0   ;;  %vm322_vm1 = vcmask 1043456   ;;  %vm180_vm2 = vcmask 523264  }
  0x19   :  { %v393_v4 = vld [vmem:[%s5049_s9] ss:$2 sm:$0x3]  ;;  %264 = vmatpush.msra.mxu2 %v241_v2  ;;  %287 = vmatpush.msra.mxu3 %v242_v3  ;;  %v177_v7 = vld [vmem:[#allocation8 + $0x68] sm:$0xff]  ;;  %v239_v8 = vld [vmem:[#allocation9] sm:$0xff]  ;;  %vm309_vm3 = vcmask 31744  }
  0x1a   :  { %v3507_v6 = vperm.slane %v393_v4, 0  ;;  %v240_v9 = vld [vmem:[#allocation9 + $0x8] sm:$0xff]  ;;  %196 = vmatpush.msra.mxu0 %v176_v5  ;;  %219 = vmatpush.msra.mxu1 %v177_v7  ;;  %v3512_v10 = vld [vmem:[%s5040_s0] sm:$0xff]  ;;  %v237_v11 = vld [vmem:[#allocation6] sm:$0xff]  ;;  %v3526_v21 = vperm.slane %v393_v4, 1  ;;  %s3412_s1 = smov 127  }
  0x1b   :  { %265 = vmatpush.msra.mxu2 %v239_v8  ;;  %v2643_v13 = vpack.i.bf16 %v3512_v10, %v5053_v12  ;;  %v174_v14 = vld [vmem:[#allocation8 + $0x50] sm:$0xff]  ;;  %v175_v15 = vld [vmem:[#allocation8 + $0x58] sm:$0xff]  ;;  %288 = vmatpush.msra.mxu3 %v240_v9  ;;  %v172_v16 = vld [vmem:[#allocation8 + $0x40] sm:$0xff]  ;;  %s3413_s15 = smov 1   ;;  %vm436_vm4 = vcmask 908288   ;;  %vm906_vm5 = vcmask 924672  }
  0x1c   :  { %5133 = vst [vmem:[#allocation17_spill] sm:$0xff] %v3507_v6  ;;  %432 = vrot.lane.b32.xlu0 %v3507_v6, %s3409_s21  ;;  %2573 = vmatmul.msk.f32.vlgmr.msra.gmra.mxu2 %vm243_vm0, %v237_v11  ;;  %v173_v17 = vld [vmem:[#allocation8 + $0x48] sm:$0xff]  ;;  %v3524_v18 = vld [vmem:[%s5040_s0 + $0x8] sm:$0xff]  ;;  %v170_v19 = vld [vmem:[#allocation8 + $0x30] sm:$0xff]  ;;  %vm1165_vm6 = vcmask 1039360   ;;  %s3415_s20 = smov 15  }
  0x1d   :  { %2644 = vrot.lane.b32.xlu1 %v2643_v13, %s3405_s28  ;;  %2575 = vmatmul.msk.f32.vlgmr.msra.gmra.mxu3 %vm243_vm0, %v237_v11  ;;  %v171_v20 = vld [vmem:[#allocation8 + $0x38] sm:$0xff]  ;;  %5134 = vst [vmem:[#allocation18_spill] sm:$0xff] %v3526_v21  ;;  %v168_v23 = vld [vmem:[#allocation8 + $0x20] sm:$0xff]  ;;  %v169_v24 = vld [vmem:[#allocation8 + $0x28] sm:$0xff]  ;;  %v2648_v25 = vpack.i.bf16 0.0, %v3524_v18  ;;  %vm1247_vm7 = vcmask 7168  }
  0x1e   :  { %197 = vmatpush.msra.mxu0 %v174_v14  ;;  %220 = vmatpush.msra.mxu1 %v175_v15  ;;  %v304_v22 = vld [vmem:[%s5046_s6] sm:$0xff]  ;;  %v166_v28 = vld [vmem:[#allocation8 + $0x10] sm:$0xff]  ;;  %v3542_v31 = vld [vmem:[%s5040_s0 + $0x10] sm:$0xff]  ;;  %vm628_vm8 = vcmask 138240   ;;  %vm988_vm9 = vcmask 121856   ;;  %vm539_vm10 = vcmask 326656  }
  0x1f   :  { %306 = vst [vmem:[#allocation1] ss:$2 sm:$0xff] %v304_v22  ;;  %v238_v26 = vld [vmem:[#allocation6 + $0x8] sm:$0xff]  ;;  %v3547_v32 = vld [vmem:[%s5040_s0 + $0x18] sm:$0xff]  ;;  %v164_v33 = vld [vmem:[#allocation8] sm:$0xff]  ;;  %vm2100_vm11 = vcmask 916480  }
  0x20   :  { %198 = vmatpush.msra.mxu0 %v172_v16  ;;  %221 = vmatpush.msra.mxu1 %v173_v17  ;;  %v2587_v27 = vld [vmem:[%s5049_s9 + $0x1] ss:$2 sm:$0x3]  ;;  %v165_v34 = vld [vmem:[#allocation8 + $0x8] sm:$0xff]  ;;  %v162_v35 = vld [vmem:[#allocation3] sm:$0xff]  ;;  %v2653_v38 = vpack.i.bf16 %v3547_v32, %v3542_v31  ;;  %s3411_s9 = smov 113  }
  0x21   :  { %v3537_v29 = vperm.slane %v2587_v27, 0  ;;  %v167_v30 = vld [vmem:[#allocation8 + $0x18] sm:$0xff]  ;;  %v163_v40 = vld [vmem:[#allocation3 + $0x8] sm:$0xff]  ;;  %v3568_v41 = vperm.slane %v2587_v27, 1  ;;  %v301_v42 = vld [vmem:[%s5043_s3 + $0x8] sm:$0xff] }
  0x22   :  { %199 = vmatpush.msra.mxu0 %v170_v19  ;;  %222 = vmatpush.msra.mxu1 %v171_v20  ;;  %v300_v39 = vld [vmem:[%s5043_s3] sm:$0xff]  ;;  %v302_v43 = vld [vmem:[%s5043_s3 + $0x10] sm:$0xff]  ;;  %v303_v44 = vld [vmem:[%s5043_s3 + $0x18] sm:$0xff]  ;;  %s3414_s3 = smov 17  }
  0x23   :  { %5135 = vst [vmem:[#allocation19_spill] sm:$0xff] %v3537_v29  ;;  %902 = vrot.lane.b32.xlu2 %v3537_v29, %s3411_s9 }
  0x24   :  { %434 = vrot.lane.b32.xlu0 %v3526_v21, %s3409_s21  ;;  %200 = vmatpush.msra.mxu0 %v168_v23  ;;  %5136 = vst [vmem:[#allocation20_spill] sm:$0xff] %v3568_v41 }
  0x25   :  { %223 = vmatpush.msra.mxu1 %v169_v24  ;;  %2649 = vrot.lane.b32.xlu1 %v2648_v25, %s3405_s28 }
  0x26   :  { %2574 = vmatmul.msk.f32.gmra.mxu2 %vm243_vm0, %v238_v26  ;;  %2576 = vmatmul.msk.f32.gmra.mxu3 %vm243_vm0, %v238_v26  ;;  %v307_v36 = vld.sshfl [vmem:[#allocation1] sm:$0xff pattern:$0x75316420]  ;;  %v308_v37 = vld.sshfl [vmem:[#allocation1 + $0x8] sm:$0xff pattern:$0x75316420] }
  0x27   :  { %201 = vmatpush.msra.mxu0 %v166_v28  ;;  %224 = vmatpush.msra.mxu1 %v167_v30 }
  0x28   :  { %2577 = vmatpush.msk.msrb.mxu2 %vm322_vm1, %v307_v36  ;;  %2582 = vmatpush.msk.msrb.mxu3 %vm322_vm1, %v308_v37 }
  0x29   :  { %202 = vmatpush.msra.mxu0 %v164_v33  ;;  %225 = vmatpush.msra.mxu1 %v165_v34 }
  0x2a   :  { %2569 = vmatmul.msk.f32.vlgmr.msra.gmra.mxu0 %vm180_vm2, %v162_v35  ;;  %2571 = vmatmul.msk.f32.vlgmr.msra.gmra.mxu1 %vm180_vm2, %v162_v35 }
  0x2b   :  { %1163 = vrot.lane.b32.xlu2 %v3526_v21, %s3412_s1 }
  0x2c   :  { %2654 = vrot.lane.b32.xlu0 %v2653_v38, %s3405_s28 }
  0x2d   :  { %1161 = vrot.lane.b32.xlu1 %v3507_v6, %s3412_s1 }
  0x2e   :  { %2578 = vmatmul.msk.f32.vlgmr.msrb.gmra.mxu2 %vm309_vm3, %v300_v39  ;;  %2583 = vmatmul.msk.f32.vlgmr.msrb.gmra.mxu3 %vm309_vm3, %v300_v39 }
  0x32   :  { %2570 = vmatmul.msk.f32.gmra.mxu0 %vm180_vm2, %v163_v40  ;;  %2572 = vmatmul.msk.f32.gmra.mxu1 %vm180_vm2, %v163_v40 }
  0x34   :  { %904 = vrot.lane.b32.xlu0 %v3568_v41, %s3411_s9 }
  0x35   :  { %1541 = vrot.lane.b32.xlu1 %v3568_v41, %s3413_s15 }
  0x36   :  { %2579 = vmatmul.msk.f32.gmra.mxu2 %vm309_vm3, %v301_v42  ;;  %2584 = vmatmul.msk.f32.gmra.mxu3 %vm309_vm3, %v301_v42 }
  0x3c   :  { %1539 = vrot.lane.b32.xlu0 %v3537_v29, %s3413_s15 }
  0x3e   :  { %2580 = vmatmul.msk.f32.gmra.mxu2 %vm309_vm3, %v302_v43  ;;  %2585 = vmatmul.msk.f32.gmra.mxu3 %vm309_vm3, %v302_v43 }
  0x46   :  { %2581 = vmatmul.msk.f32.gmra.mxu2 %vm309_vm3, %v303_v44  ;;  %2586 = vmatmul.msk.f32.gmra.mxu3 %vm309_vm3, %v303_v44 }
  0x7d   :  { %v903_v47 = vpop.permute.xlu2 %902 }
  0x7e   :  { %v3631_v1 = vmul.f32 0.0, %v903_v47 }
  0x85   :  { %v3614_v56 = vpop.permute.xlu2 %1163 }
  0x86   :  { %v1172_v58 = vmul.f32 %v3614_v56, %v3524_v18  ;;  %v1187_v22 = vmul.f32 %v3614_v56, %v3547_v32 }
  0x8e   :  { %v433_v45 = vpop.permute.xlu0 %432 }
  0x8f   :  { %v3595_v46 = vpop.permute.xlu1 %2644  ;;  %v3599_v49 = vmul.f32 0.0, %v433_v45 }
  0x90   :  { %5137 = vst [vmem:[#allocation21_spill] sm:$0xff] %v3595_v46  ;;  %v5051_v50 = vunpack.i.h.bf16 %v3595_v46 }
  0x96   :  { %v3597_v48 = vpop.permute.xlu0 %434 }
  0x97   :  { %v443_v51 = vmul.f32 %v3597_v48, %v3524_v18  ;;  %v3604_v52 = vpop.permute.xlu1 %2649  ;;  %v3629_v0 = vsel %vm436_vm4, %v433_v45, %v3597_v48  ;;  %v458_v28 = vmul.f32 %v3597_v48, %v3547_v32 }
  0x98   :  { %5138 = vst [vmem:[#allocation22_spill] sm:$0xff] %v3604_v52  ;;  %v2651_v53 = vunpack.i.l.bf16 %v3604_v52  ;;  %v442_v5 = vmul.f32 %v3629_v0, %v3512_v10  ;;  %v457_v27 = vmul.f32 %v3629_v0, %v3542_v31 }
  0x99   :  { %v2658_v54 = vpack.i.bf16 %v3599_v49, %v443_v51 }
  0x9a   :  { %v3612_v55 = vsel %vm243_vm0, %v5051_v50, %v2651_v53  ;;  %v2673_v19 = vpack.i.bf16 %v442_v5, %v3599_v49  ;;  %v2678_v44 = vpack.i.bf16 %v458_v28, %v457_v27 }
  0x9b   :  { %2659 = vrot.lane.b32.xlu2 %v2658_v54, %s3414_s3  ;;  %5139 = vst [vmem:[#allocation23_spill] sm:$0xff] %v3612_v55 }
  0x9e   :  { %v3616_v57 = vpop.permute.xlu0 %2654 }
  0x9f   :  { %5140 = vst [vmem:[#allocation24_spill] sm:$0xff] %v3616_v57  ;;  %v1162_v59 = vpop.permute.xlu1 %1161  ;;  %v3620_v60 = vpop.f32.mrf.mxu2 }
  0xa0   :  { %5141 = vst [vmem:[#allocation25_spill] sm:$0xff] %v3620_v60  ;;  %v3622_v61 = vmul.f32 0.0, %v1162_v59  ;;  %v3624_v62 = vpop.f32.mrf.mxu3  ;;  %v3650_v9 = vsel %vm1165_vm6, %v1162_v59, %v3614_v56 }
  0xa1   :  { %5142 = vst [vmem:[#allocation26_spill] sm:$0xff] %v3624_v62  ;;  %v1186_v20 = vmul.f32 %v3650_v9, %v3542_v31  ;;  %v1171_v23 = vmul.f32 %v3650_v9, %v3512_v10 }
  0xa2   :  { %v2668_v63 = vpack.i.bf16 %v3622_v61, %v1172_v58 }
  0xa3   :  { %v2698_v34 = vpack.i.bf16 %v1187_v22, %v1186_v20  ;;  %v2693_v36 = vpack.i.bf16 %v1171_v23, %v3622_v61  ;;  %v1177_v22 = vmul.f32 %v3650_v9, %v3620_v60 }
  0xa4   :  { %2669 = vrot.lane.b32.xlu1 %v2668_v63, %s3413_s15 }
  0xa6   :  { %v3634_v2 = vpop.permute.xlu0 %904 }
  0xa7   :  { %v3636_v3 = vpop.f32.mrf.mxu0  ;;  %v913_v4 = vmul.f32 %v3634_v2, %v3524_v18  ;;  %v3644_v7 = vsel %vm906_vm5, %v903_v47, %v3634_v2  ;;  %v928_v8 = vmul.f32 %v3634_v2, %v3547_v32  ;;  %v3652_v11 = vpop.f32.mrf.mxu1 }
  0xa8   :  { %5143 = vst [vmem:[#allocation27_spill] sm:$0xff] %v3636_v3  ;;  %v927_v13 = vmul.f32 %v3644_v7, %v3542_v31  ;;  %v1542_v25 = vpop.permute.xlu1 %1541  ;;  %v446_v29 = vmul.f32 %v3597_v48, %v3652_v11 }
  0xa9   :  { %5144 = vst [vmem:[#allocation28_spill] sm:$0xff] %v3652_v11  ;;  %v3656_v14 = vpop.f32.mrf.mxu2  ;;  %v2663_v15 = vpack.i.bf16 %v3631_v1, %v913_v4  ;;  %v3659_v16 = vpop.f32.mrf.mxu3  ;;  %v3737_v4 = vmul.f32 0.0, %v1542_v25 }
  0xaa   :  { %5145 = vst [vmem:[#allocation29_spill] sm:$0xff] %v3656_v14  ;;  %v2688_v17 = vpack.i.bf16 %v928_v8, %v927_v13  ;;  %v3672_v24 = vmul.f32 %v3644_v7, %v3656_v14  ;;  %v3677_v26 = vmul.f32 %v3634_v2, %v3659_v16 }
  0xab   :  { %5146 = vst [vmem:[#allocation30_spill] sm:$0xff] %v3659_v16  ;;  %2664 = vrot.lane.b32.xlu2 %v2663_v15, %s3415_s20  ;;  %v912_v15 = vmul.f32 %v3644_v7, %v3512_v10 }
  0xac   :  { %2689 = vrot.lane.b32.xlu0 %v2688_v17, %s3415_s20  ;;  %2674 = vrot.lane.b32.xlu1 %v2673_v19, %s3414_s3  ;;  %v2738_v17 = vpack.i.bf16 %v1177_v22, %v3622_v61 }
  0xae   :  { %v3683_v30 = vpop.permute.xlu0 %1539 }
  0xaf   :  { %v3685_v33 = vpop.f32.mrf.mxu0  ;;  %v3687_v35 = vpop.f32.mrf.mxu1  ;;  %v3692_v37 = vsel %vm1247_vm7, %v3683_v30, %v1542_v25  ;;  %v1547_v45 = vmul.f32 %v3683_v30, %v3512_v10  ;;  %v5052_v10 = vpack.i.bf16 0.0, %v3624_v62  ;;  %v1553_v21 = vmul.f32 %v3683_v30, %v3620_v60 }
  0xb0   :  { %5147 = vst [vmem:[#allocation31_spill] sm:$0xff] %v3685_v33  ;;  %v3700_v40 = vmul.f32 %v3597_v48, %v3687_v35  ;;  %v3704_v42 = vmul.f32 %v3644_v7, %v3685_v33  ;;  %v3712_v47 = vmul.f32 %v3650_v9, %v3685_v33  ;;  %v1548_v51 = vmul.f32 %v3692_v37, %v3524_v18 }
  0xb1   :  { %5148 = vst [vmem:[#allocation32_spill] sm:$0xff] %v3687_v35  ;;  %v3696_v39 = vpop.f32.mrf.mxu2  ;;  %v3706_v43 = vpop.f32.mrf.mxu3  ;;  %v3723_v58 = vmul.f32 %v3629_v0, %v3685_v33  ;;  %v3743_v8 = vmul.f32 %v3634_v2, %v3687_v35  ;;  %v3765_v25 = vmul.f32 %v3692_v37, %v3547_v32 }
  0xb2   :  { %5149 = vst [vmem:[#allocation33_spill] sm:$0xff] %v3696_v39  ;;  %v3730_v63 = vmul.f32 %v3629_v0, %v3696_v39  ;;  %v3734_v18 = vmul.f32 %v3597_v48, %v3706_v43  ;;  %v3747_v13 = vmul.f32 %v3644_v7, %v3696_v39  ;;  %v3755_v19 = vmul.f32 %v3634_v2, %v3706_v43 }
  0xb3   :  { %5150 = vst [vmem:[#allocation34_spill] sm:$0xff] %v3706_v43  ;;  %2699 = vrot.lane.b32.xlu2 %v2698_v34, %s3413_s15  ;;  %v2703_v20 = vpack.i.bf16 %v1548_v51, %v1547_v45  ;;  %v3761_v23 = vmul.f32 %v3692_v37, %v3706_v43 }
  0xb4   :  { %2694 = vrot.lane.b32.xlu0 %v2693_v36, %s3413_s15  ;;  %2679 = vrot.lane.b32.xlu1 %v2678_v44, %s3414_s3  ;;  %5151 = vst [vmem:[#allocation35_spill] sm:$0xff] %v3765_v25  ;;  %v3778_v44 = vmul.f32 %v3692_v37, %v3659_v16  ;;  %v2683_v36 = vpack.i.bf16 %v912_v15, %v3631_v1 }
  0xb5   :  { %v448_v15 = vmul.f32 %v3629_v0, %v3620_v60 }
  0xb6   :  { %5153 = vst [vmem:[#allocation37_spill] sm:$0xff] %v3778_v44  ;;  %v3917_v44 = vpack.i.bf16 %v3659_v16, %v3656_v14 }
  0xb7   :  { %v2718_v53 = vpack.i.bf16 %v448_v15, %v3599_v49  ;;  %v449_v15 = vmul.f32 %v3597_v48, %v3624_v62 }
  0xb8   :  { %5161 = vst [vmem:[#allocation45_spill] sm:$0xff] %v3917_v44 }
  0xb9   :  { %v3770_v28 = vpop.f32.mrf.mxu2  ;;  %v3780_v45 = vpop.f32.mrf.mxu3 }
  0xba   :  { %5152 = vst [vmem:[#allocation36_spill] sm:$0xff] %v3770_v28  ;;  %v3784_v32 = vmul.f32 %v3629_v0, %v3770_v28  ;;  %v3788_v51 = vmul.f32 %v3644_v7, %v3770_v28  ;;  %v3792_v50 = vmul.f32 %v3650_v9, %v3770_v28  ;;  %v3798_v34 = vmul.f32 %v3597_v48, %v3780_v45 }
  0xbb   :  { %5154 = vst [vmem:[#allocation38_spill] sm:$0xff] %v3780_v45  ;;  %2704 = vrot.lane.b32.xlu2 %v2703_v20, %s3412_s1  ;;  %v3802_v27 = vmul.f32 %v3634_v2, %v3780_v45  ;;  %v3824_v20 = vpack.i.bf16 %v3620_v60, %v5053_v12  ;;  %v445_v12 = vmul.f32 %v3629_v0, %v3636_v3 }
  0xbc   :  { %2714 = vrot.lane.b32.xlu0 %v5052_v10, %s3405_s28  ;;  %2684 = vrot.lane.b32.xlu1 %v2683_v36, %s3415_s20 }
  0xbd   :  { %5155 = vst [vmem:[#allocation39_spill] sm:$0xff] %v3824_v20  ;;  %v2758_v52 = vpack.i.bf16 %v446_v29, %v445_v12  ;;  %v919_v29 = vmul.f32 %v3634_v2, %v3624_v62 }
  0xc1   :  { %v3828_v36 = vpop.f32.mrf.mxu2  ;;  %v3830_v54 = vpop.f32.mrf.mxu3 }
  0xc2   :  { %5156 = vst [vmem:[#allocation40_spill] sm:$0xff] %v3828_v36  ;;  %v3835_v5 = vmul.f32 %v3644_v7, %v3828_v36  ;;  %v3839_v10 = vmul.f32 %v3650_v9, %v3828_v36  ;;  %v3843_v59 = vmul.f32 %v3629_v0, %v3828_v36  ;;  %v3850_v22 = vmul.f32 %v3597_v48, %v3830_v54 }
  0xc3   :  { %5157 = vst [vmem:[#allocation41_spill] sm:$0xff] %v3830_v54  ;;  %2709 = vrot.lane.b32.xlu2 %v3824_v20, %s3405_s28  ;;  %v3854_v38 = vmul.f32 %v3634_v2, %v3830_v54  ;;  %v918_v20 = vmul.f32 %v3644_v7, %v3620_v60  ;;  %v5203_v60 = vld [vmem:[#allocation21_spill] sm:$0xff] }
  0xc4   :  { %2739 = vrot.lane.b32.xlu0 %v2738_v17, %s3413_s15  ;;  %2719 = vrot.lane.b32.xlu1 %v2718_v53, %s3414_s3  ;;  %v2723_v53 = vpack.i.bf16 %v3599_v49, %v449_v15 }
  0xc5   :  { %v2728_v46 = vpack.i.bf16 %v918_v20, %v3631_v1  ;;  %v1554_v20 = vmul.f32 %v3692_v37, %v3624_v62 }
  0xc9   :  { %v3876_v57 = vpop.f32.mrf.mxu2  ;;  %v3879_v55 = vpop.f32.mrf.mxu3 }
  0xca   :  { %5158 = vst [vmem:[#allocation42_spill] sm:$0xff] %v3876_v57  ;;  %v3883_v41 = vmul.f32 %v3629_v0, %v3876_v57  ;;  %v3887_v17 = vmul.f32 %v3644_v7, %v3876_v57  ;;  %v3893_v6 = vmul.f32 %v3597_v48, %v3879_v55  ;;  %v3897_v15 = vmul.f32 %v3634_v2, %v3879_v55 }
  0xcb   :  { %5159 = vst [vmem:[#allocation43_spill] sm:$0xff] %v3879_v55  ;;  %2724 = vrot.lane.b32.xlu2 %v2723_v53, %s3414_s3  ;;  %v3902_v12 = vmul.f32 %v3692_v37, %v3879_v55  ;;  %v915_v53 = vmul.f32 %v3644_v7, %v3636_v3  ;;  %v463_v7 = vmul.f32 %v3629_v0, %v3656_v14 }
  0xcc   :  { %2759 = vrot.lane.b32.xlu0 %v2758_v52, %s3414_s3  ;;  %2729 = vrot.lane.b32.xlu1 %v2728_v46, %s3415_s20  ;;  %v1178_v52 = vmul.f32 %v3614_v56, %v3624_v62  ;;  %v2733_v46 = vpack.i.bf16 %v3631_v1, %v919_v29  ;;  %v916_v29 = vmul.f32 %v3634_v2, %v3652_v11 }
  0xcd   :  { %5160 = vst [vmem:[#allocation44_spill] sm:$0xff] %v3902_v12  ;;  %v464_v2 = vmul.f32 %v3597_v48, %v3659_v16  ;;  %v1174_v0 = vmul.f32 %v3650_v9, %v3636_v3  ;;  %v1175_v48 = vmul.f32 %v3614_v56, %v3652_v11 }
  0xce   :  { %v2743_v25 = vpack.i.bf16 %v3622_v61, %v1178_v52  ;;  %v1551_v52 = vmul.f32 %v3692_v37, %v3652_v11  ;;  %v2768_v12 = vpack.i.bf16 %v916_v29, %v915_v53  ;;  %v5163_v29 = vmov 0.0  }
  0xcf   :  { %v2773_v53 = vpack.i.bf16 %v1175_v48, %v1174_v0  ;;  %v5167_v0 = vpack.i.bf16 %v3704_v42, %v3631_v1  ;;  %v5168_v48 = vpack.i.bf16 %v3723_v58, %v3599_v49  ;;  %v5170_v42 = vpack.i.bf16 %v3631_v1, %v3743_v8 }
  0xd0   :  { %v5171_v58 = vpack.i.bf16 %v3755_v19, %v3747_v13  ;;  %v5068_v8 = vpack.i.bf16 0.0, %v3780_v45  ;;  %v5173_v13 = vpack.i.bf16 %v3788_v51, %v3631_v1  ;;  %v5176_v51 = vpack.i.bf16 %v3792_v50, %v3622_v61 }
  0xd3   :  { %2734 = vrot.lane.b32.xlu2 %v2733_v46, %s3415_s20  ;;  %v2748_v46 = vpack.i.bf16 %v1554_v20, %v1553_v21  ;;  %v3947_v21 = vpack.i.bf16 %v3652_v11, %v3636_v3 }
  0xd4   :  { %2764 = vrot.lane.b32.xlu0 %v3917_v44, %s3405_s28  ;;  %2744 = vrot.lane.b32.xlu1 %v2743_v25, %s3413_s15  ;;  %v2783_v25 = vpack.i.bf16 %v3737_v4, %v1551_v52  ;;  %v1550_v44 = vmul.f32 %v3683_v30, %v3636_v3  ;;  %v2803_v52 = vpack.i.bf16 %v3685_v33, %v5163_v29 }
  0xd5   :  { %5162 = vst [vmem:[#allocation46_spill] sm:$0xff] %v3947_v21 }
  0xd6   :  { %v2778_v20 = vpack.i.bf16 %v1550_v44, %v3737_v4  ;;  %v5164_v44 = vpack.i.bf16 %v3677_v26, %v3672_v24  ;;  %v2808_v24 = vpack.i.bf16 0.0, %v3687_v35  ;;  %v5166_v26 = vpack.i.bf16 %v3712_v47, %v3622_v61 }
  0xd7   :  { %v5169_v47 = vpack.i.bf16 %v3734_v18, %v3730_v63  ;;  %v1180_v18 = vmul.f32 %v3650_v9, %v3696_v39 }
  0xdb   :  { %2749 = vrot.lane.b32.xlu2 %v2748_v46, %s3412_s1  ;;  %v1192_v46 = vmul.f32 %v3650_v9, %v3656_v14 }
  0xdc   :  { %2769 = vrot.lane.b32.xlu0 %v2768_v12, %s3415_s20  ;;  %2784 = vrot.lane.b32.xlu1 %v2783_v25, %s3412_s1  ;;  %v2788_v12 = vpack.i.bf16 %v464_v2, %v463_v7  ;;  %v1193_v25 = vmul.f32 %v3614_v56, %v3659_v16  ;;  %v2813_v2 = vpack.i.bf16 %v3706_v43, %v3696_v39 }
  0xde   :  { %v2798_v7 = vpack.i.bf16 %v1193_v25, %v1192_v46  ;;  %v1181_v46 = vmul.f32 %v3614_v56, %v3706_v43  ;;  %v5204_v43 = vld [vmem:[#allocation22_spill] sm:$0xff] }
  0xe0   :  { %v2858_v25 = vpack.i.bf16 %v1181_v46, %v1180_v18 }
  0xe3   :  { %2754 = vrot.lane.b32.xlu2 %v3947_v21, %s3405_s28 }
  0xe4   :  { %2779 = vrot.lane.b32.xlu0 %v2778_v20, %s3412_s1  ;;  %2789 = vrot.lane.b32.xlu1 %v2788_v12, %s3414_s3  ;;  %v5165_v20 = vpack.i.bf16 %v3599_v49, %v3700_v40  ;;  %v1190_v40 = vmul.f32 %v3614_v56, %v3687_v35 }
  0xeb   :  { %2774 = vrot.lane.b32.xlu2 %v2773_v53, %s3413_s15  ;;  %v2843_v53 = vpack.i.bf16 %v3622_v61, %v1190_v40 }
  0xec   :  { %2794 = vrot.lane.b32.xlu0 %v5164_v44, %s3415_s20  ;;  %2804 = vrot.lane.b32.xlu1 %v2803_v52, %s3405_s28  ;;  %v5172_v44 = vpack.i.bf16 %v3784_v32, %v3599_v49 }
  0xf3   :  { %2799 = vrot.lane.b32.xlu2 %v2798_v7, %s3413_s15  ;;  %v4037_v7 = vpack.i.bf16 %v3770_v28, %v5163_v29 }
  0xf4   :  { %2824 = vrot.lane.b32.xlu0 %v5165_v20, %s3414_s3  ;;  %2814 = vrot.lane.b32.xlu1 %v2813_v2, %s3405_s28  ;;  %v1184_v2 = vmul.f32 %v3614_v56, %v3780_v45 }
  0xf5   :  { %v3984_v12 = vpop.permute.xlu2 %2659  ;;  %5175 = vst [vmem:[#allocation48_spill] sm:$0xff] %v4037_v7 }
  0xf6   :  { %v2898_v20 = vpack.i.bf16 %v3622_v61, %v1184_v2  ;;  %v2661_v40 = vunpack.i.l.bf16 %v3984_v12  ;;  %v5182_v2 = vpack.i.bf16 %v3835_v5, %v3631_v1  ;;  %v4115_v5 = vpack.i.bf16 %v3879_v55, %v3876_v57 }
  0xf8   :  { %5183 = vst [vmem:[#allocation50_spill] sm:$0xff] %v4115_v5 }
  0xfb   :  { %2809 = vrot.lane.b32.xlu2 %v2808_v24, %s3405_s28 }
  0xfc   :  { %2839 = vrot.lane.b32.xlu0 %v5166_v26, %s3413_s15  ;;  %2829 = vrot.lane.b32.xlu1 %v5167_v0, %s3415_s20 }
 0x103   :  { %2819 = vrot.lane.b32.xlu2 %v5168_v48, %s3414_s3 }
 0x104   :  { %2849 = vrot.lane.b32.xlu0 %v5169_v47, %s3414_s3  ;;  %2844 = vrot.lane.b32.xlu1 %v2843_v53, %s3413_s15  ;;  %v4059_v53 = vpack.i.bf16 %v3828_v36, %v5163_v29  ;;  %v5178_v47 = vpack.i.bf16 %v3599_v49, %v3798_v34 }
 0x105   :  { %v4002_v52 = vpop.permute.xlu2 %2664 }
 0x106   :  { %5177 = vst [vmem:[#allocation49_spill] sm:$0xff] %v4059_v53 }
 0x10b   :  { %2834 = vrot.lane.b32.xlu2 %v5170_v42, %s3415_s20  ;;  %v5179_v42 = vpack.i.bf16 %v3599_v49, %v3850_v22  ;;  %v5180_v22 = vpack.i.bf16 %v3631_v1, %v3802_v27 }
 0x10c   :  { %2854 = vrot.lane.b32.xlu0 %v5171_v58, %s3415_s20  ;;  %2874 = vrot.lane.b32.xlu1 %v5172_v44, %s3414_s3 }
 0x10d   :  { %v4016_v63 = vpop.permute.xlu2 %2699 }
 0x113   :  { %2859 = vrot.lane.b32.xlu2 %v2858_v25, %s3413_s15 }
 0x114   :  { %2869 = vrot.lane.b32.xlu0 %v5068_v8, %s3405_s28  ;;  %2884 = vrot.lane.b32.xlu1 %v5173_v13, %s3415_s20  ;;  %v5181_v13 = vpack.i.bf16 %v3839_v10, %v3622_v61  ;;  %v2666_v10 = vunpack.i.l.bf16 %v4002_v52 }
 0x115   :  { %v4031_v19 = vpop.permute.xlu2 %2704 }
 0x116   :  { %5174 = vst [vmem:[#allocation47_spill] sm:$0xff] %v4031_v19  ;;  %v4033_v32 = vpop.permute.xlu1 %2669 }
 0x117   :  { %v2671_v58 = vunpack.i.l.bf16 %v4033_v32 }
 0x11b   :  { %2864 = vrot.lane.b32.xlu2 %v4037_v7, %s3405_s28 }
 0x11c   :  { %2894 = vrot.lane.b32.xlu0 %v5176_v51, %s3413_s15  ;;  %2899 = vrot.lane.b32.xlu1 %v2898_v20, %s3413_s15 }
 0x11d   :  { %v4049_v24 = vpop.permute.xlu2 %2709 }
 0x11e   :  { %v4051_v26 = vpop.permute.xlu0 %2689  ;;  %v4053_v0 = vpop.permute.xlu1 %2674 }
 0x11f   :  { %v5070_v48 = vunpack.i.h.bf16 %v4053_v0 }
 0x121   :  { %v4064_v50 = vsel %vm628_vm8, %v5070_v48, %v2661_v40  ;;  %v5073_v40 = vunpack.i.h.bf16 %v4049_v24 }
 0x123   :  { %2879 = vrot.lane.b32.xlu2 %v5178_v47, %s3414_s3 }
 0x124   :  { %2919 = vrot.lane.b32.xlu0 %v5179_v42, %s3414_s3  ;;  %2904 = vrot.lane.b32.xlu1 %v4059_v53, %s3405_s28  ;;  %v1196_v42 = vmul.f32 %v3614_v56, %v3830_v54 }
 0x125   :  { %v4077_v44 = vpop.permute.xlu2 %2724 }
 0x126   :  { %v4079_v18 = vpop.permute.xlu0 %2694  ;;  %v4081_v46 = vpop.permute.xlu1 %2679  ;;  %v2938_v8 = vpack.i.bf16 %v3622_v61, %v1196_v42  ;;  %v5185_v61 = vpack.i.bf16 %v3843_v59, %v3599_v49  ;;  %v5187_v42 = vpack.i.bf16 %v3893_v6, %v3883_v41  ;;  %v2662_v49 = vunpack.i.h.bf16 %v3984_v12 }
 0x127   :  { %v5069_v25 = vunpack.i.h.bf16 %v4079_v18  ;;  %v5188_v12 = vpack.i.bf16 %v3631_v1, %v3854_v38 }
 0x129   :  { %v4087_v34 = vsel %vm1247_vm7, %v5069_v25, %v2671_v58 }
 0x12b   :  { %2889 = vrot.lane.b32.xlu2 %v5180_v22, %s3415_s20  ;;  %v5072_v22 = vpack.i.bf16 0.0, %v3830_v54 }
 0x12c   :  { %2934 = vrot.lane.b32.xlu0 %v5181_v13, %s3413_s15  ;;  %2924 = vrot.lane.b32.xlu1 %v5182_v2, %s3415_s20 }
 0x12d   :  { %v4101_v20 = vpop.permute.xlu2 %2734 }
 0x12e   :  { %v4103_v51 = vpop.permute.xlu0 %2714  ;;  %v4106_v47 = vpop.permute.xlu1 %2684 }
 0x12f   :  { %v2716_v27 = vunpack.i.l.bf16 %v4103_v51  ;;  %v5071_v58 = vunpack.i.h.bf16 %v4106_v47 }
 0x131   :  { %v4121_v13 = vsel %vm243_vm0, %v5073_v40, %v2716_v27  ;;  %v4126_v2 = vsel %vm988_vm9, %v5071_v58, %v2666_v10  ;;  %v2726_v10 = vunpack.i.l.bf16 %v4077_v44 }
 0x133   :  { %2909 = vrot.lane.b32.xlu2 %v5072_v22, %s3405_s28 }
 0x134   :  { %2944 = vrot.lane.b32.xlu0 %v4115_v5, %s3405_s28  ;;  %2939 = vrot.lane.b32.xlu1 %v2938_v8, %s3413_s15  ;;  %v5186_v8 = vpack.i.bf16 %v3897_v15, %v3887_v17  ;;  %v2736_v17 = vunpack.i.l.bf16 %v4101_v20 }
 0x135   :  { %v4135_v25 = vpop.permute.xlu2 %2749 }
 0x136   :  { %5184 = vst [vmem:[#allocation51_spill] sm:$0xff] %v4135_v25  ;;  %v4137_v27 = vpop.permute.xlu0 %2739  ;;  %v4139_v48 = vpop.permute.xlu1 %2719 }
 0x137   :  { %v5077_v58 = vunpack.i.h.bf16 %v4139_v48 }
 0x139   :  { %v4146_v22 = vsel %vm628_vm8, %v5077_v58, %v2726_v10  ;;  %v1556_v10 = vmul.f32 %v3683_v30, %v3696_v39 }
 0x13b   :  { %2914 = vrot.lane.b32.xlu2 %v5185_v61, %s3414_s3  ;;  %v2958_v41 = vpack.i.bf16 %v1556_v10, %v3737_v4  ;;  %v1198_v10 = vmul.f32 %v3650_v9, %v3876_v57 }
 0x13c   :  { %2954 = vrot.lane.b32.xlu0 %v5186_v8, %s3415_s20  ;;  %2949 = vrot.lane.b32.xlu1 %v5187_v42, %s3414_s3  ;;  %v5189_v42 = vpack.i.bf16 %v3737_v4, %v3761_v23  ;;  %v5080_v23 = vunpack.i.h.bf16 %v4137_v27 }
 0x13d   :  { %v4160_v40 = vpop.permute.xlu2 %2754 }
 0x13e   :  { %v4162_v21 = vpop.permute.xlu0 %2759  ;;  %v4167_v59 = vpop.permute.xlu1 %2729 }
 0x13f   :  { %v5076_v61 = vunpack.i.l.bf16 %v4162_v21  ;;  %v5075_v15 = vunpack.i.h.bf16 %v4167_v59 }
 0x141   :  { %v4175_v6 = vsel %vm628_vm8, %v2662_v49, %v5076_v61  ;;  %v4181_v8 = vsel %vm988_vm9, %v5075_v15, %v2736_v17  ;;  %v1199_v17 = vmul.f32 %v3614_v56, %v3879_v55  ;;  %v2672_v15 = vunpack.i.h.bf16 %v4033_v32 }
 0x142   :  { %v2717_v55 = vunpack.i.h.bf16 %v4103_v51 }
 0x143   :  { %2929 = vrot.lane.b32.xlu2 %v5188_v12, %s3415_s20  ;;  %v2968_v56 = vpack.i.bf16 %v1199_v17, %v1198_v10  ;;  %v1560_v10 = vmul.f32 %v3692_v37, %v3780_v45 }
 0x144   :  { %2959 = vrot.lane.b32.xlu0 %v2958_v41, %s3412_s1  ;;  %2964 = vrot.lane.b32.xlu1 %v5189_v42, %s3412_s1  ;;  %v1562_v41 = vmul.f32 %v3683_v30, %v3542_v31  ;;  %v5190_v31 = vld [vmem:[#allocation35_spill] sm:$0xff] }
 0x145   :  { %v4192_v49 = vpop.permute.xlu2 %2774  ;;  %v5191_v58 = vpack.i.bf16 %v3737_v4, %v5190_v31 }
 0x146   :  { %v5079_v1 = vunpack.i.l.bf16 %v4192_v49  ;;  %v4200_v38 = vpop.permute.xlu0 %2764  ;;  %v4204_v12 = vpop.permute.xlu1 %2744  ;;  %v2978_v32 = vpack.i.bf16 %v1562_v41, %v3737_v4  ;;  %v1568_v41 = vmul.f32 %v3683_v30, %v3656_v14 }
 0x147   :  { %v2746_v42 = vunpack.i.l.bf16 %v4204_v12 }
 0x148   :  { %v4211_v9 = vsel %vm1247_vm7, %v2672_v15, %v5079_v1  ;;  %v1559_v15 = vmul.f32 %v3683_v30, %v3770_v28  ;;  %v2993_v1 = vpack.i.bf16 %v1568_v41, %v3737_v4 }
 0x149   :  { %v4217_v61 = vsel %vm1247_vm7, %v5080_v23, %v2746_v42  ;;  %v2667_v42 = vunpack.i.h.bf16 %v4002_v52  ;;  %v5193_v23 = vld [vmem:[#allocation37_spill] sm:$0xff] }
 0x14a   :  { %v5194_v52 = vpack.i.bf16 %v3737_v4, %v5193_v23 }
 0x14b   :  { %2969 = vrot.lane.b32.xlu2 %v2968_v56, %s3413_s15 }
 0x14c   :  { %2979 = vrot.lane.b32.xlu0 %v2978_v32, %s3412_s1  ;;  %2984 = vrot.lane.b32.xlu1 %v5191_v58, %s3412_s1  ;;  %v2973_v58 = vpack.i.bf16 %v1560_v10, %v1559_v15  ;;  %v1565_v15 = vmul.f32 %v3683_v30, %v3685_v33  ;;  %v1566_v10 = vmul.f32 %v3692_v37, %v3687_v35 }
 0x14d   :  { %v4225_v29 = vpop.permute.xlu2 %2799 }
 0x14e   :  { %v4231_v17 = vpop.permute.xlu0 %2769  ;;  %v4236_v56 = vpop.permute.xlu1 %2784  ;;  %v2988_v35 = vpack.i.bf16 %v1566_v10, %v1565_v15 }
 0x14f   :  { %5192 = vst [vmem:[#allocation35_spill] sm:$0xff] %v4236_v56  ;;  %v5082_v32 = vunpack.i.l.bf16 %v4231_v17  ;;  %v5095_v53 = vunpack.i.l.bf16 %v4236_v56 }
 0x151   :  { %v4242_v31 = vsel %vm988_vm9, %v2667_v42, %v5082_v32  ;;  %v5096_v42 = vunpack.i.l.bf16 %v4200_v38 }
 0x153   :  { %2974 = vrot.lane.b32.xlu2 %v2973_v58, %s3412_s1  ;;  %v1574_v58 = vmul.f32 %v3683_v30, %v3876_v57  ;;  %v5129_v57 = vunpack.i.l.bf16 %v4225_v29 }
 0x154   :  { %2994 = vrot.lane.b32.xlu0 %v2993_v1, %s3412_s1  ;;  %2999 = vrot.lane.b32.xlu1 %v5194_v52, %s3412_s1  ;;  %v5094_v1 = vunpack.i.h.bf16 %v4031_v19 }
 0x155   :  { %v2810_v7 = vpop.permute.xlu2 %2809  ;;  %v3008_v25 = vpack.i.bf16 %v1574_v58, %v3737_v4 }
 0x156   :  { %v2812_v32 = vunpack.i.h.bf16 %v2810_v7  ;;  %v2780_v41 = vpop.permute.xlu0 %2779  ;;  %v4260_v23 = vpop.permute.xlu1 %2789 }
 0x157   :  { %v2782_v52 = vunpack.i.h.bf16 %v2780_v41  ;;  %v2781_v5 = vunpack.i.l.bf16 %v2780_v41  ;;  %v1571_v41 = vmul.f32 %v3683_v30, %v3828_v36  ;;  %v5199_v30 = vld [vmem:[#allocation18_spill] sm:$0xff] }
 0x158   :  { %v4265_v33 = vsel %vm243_vm0, %v2812_v32, %v5096_v42  ;;  %v5197_v32 = vld [vmem:[#allocation44_spill] sm:$0xff] }
 0x159   :  { %v4270_v16 = vsel %vm1165_vm6, %v2782_v52, %v5095_v53  ;;  %v4275_v14 = vsel %vm1165_vm6, %v5094_v1, %v2781_v5  ;;  %v5198_v15 = vpack.i.bf16 %v3737_v4, %v5197_v32  ;;  %v1572_v5 = vmul.f32 %v3692_v37, %v3830_v54 }
 0x15a   :  { %5195 = vst [vmem:[#allocation37_spill] sm:$0xff] %v4270_v16 }
 0x15b   :  { %5196 = vst [vmem:[#allocation52_spill] sm:$0xff] %v4275_v14  ;;  %2989 = vrot.lane.b32.xlu2 %v2988_v35, %s3412_s1  ;;  %v2811_v35 = vunpack.i.l.bf16 %v2810_v7  ;;  %v3003_v1 = vpack.i.bf16 %v1572_v5, %v1571_v41  ;;  %v5101_v7 = vunpack.i.l.bf16 %v4260_v23 }
 0x15c   :  { %3009 = vrot.lane.b32.xlu0 %v3008_v25, %s3412_s1  ;;  %3014 = vrot.lane.b32.xlu1 %v5198_v15, %s3412_s1 }
 0x15d   :  { %v4284_v10 = vpop.permute.xlu2 %2819 }
 0x15e   :  { %v4290_v52 = vpop.permute.xlu0 %2794  ;;  %v4292_v58 = vpop.permute.xlu1 %2804  ;;  %v5102_v42 = vunpack.i.h.bf16 %v4284_v10 }
 0x15f   :  { %v5097_v25 = vunpack.i.h.bf16 %v4292_v58  ;;  %v5098_v37 = vunpack.i.l.bf16 %v4290_v52 }
 0x161   :  { %v4298_v4 = vsel %vm243_vm0, %v5097_v25, %v2811_v35  ;;  %v5200_v25 = vld [vmem:[#allocation17_spill] sm:$0xff] }
 0x163   :  { %3004 = vrot.lane.b32.xlu2 %v3003_v1, %s3412_s1 }
 0x164   :  { %1798 = vrot.lane.b32.xlu0 %v5199_v30, %s3415_s20 }
 0x165   :  { %v2835_v32 = vpop.permute.xlu2 %2834 }
 0x166   :  { %v2837_v15 = vunpack.i.h.bf16 %v2835_v32  ;;  %v2825_v53 = vpop.permute.xlu0 %2824  ;;  %v4306_v41 = vpop.permute.xlu1 %2814 }
 0x167   :  { %v2827_v5 = vunpack.i.h.bf16 %v2825_v53  ;;  %v2826_v14 = vunpack.i.l.bf16 %v2825_v53  ;;  %v2747_v53 = vunpack.i.h.bf16 %v4204_v12 }
 0x168   :  { %v4311_v1 = vsel %vm988_vm9, %v2837_v15, %v5098_v37 }
 0x169   :  { %v4316_v35 = vsel %vm628_vm8, %v2827_v5, %v5101_v7  ;;  %v4321_v30 = vsel %vm628_vm8, %v5102_v42, %v2826_v14  ;;  %v2836_v5 = vunpack.i.l.bf16 %v2835_v32  ;;  %v2816_v42 = vunpack.i.l.bf16 %v4306_v41 }
 0x16a   :  { %v2711_v32 = vunpack.i.l.bf16 %v4049_v24 }
 0x16b   :  { %1796 = vrot.lane.b32.xlu2 %v5200_v25, %s3415_s20 }
 0x16d   :  { %v4325_v16 = vpop.permute.xlu2 %2859 }
 0x16e   :  { %v5113_v15 = vunpack.i.l.bf16 %v4325_v16  ;;  %v4329_v37 = vpop.permute.xlu0 %2839  ;;  %v4331_v19 = vpop.permute.xlu1 %2829 }
 0x16f   :  { %v5118_v7 = vunpack.i.h.bf16 %v4331_v19 }
 0x170   :  { %v4337_v14 = vsel %vm1247_vm7, %v2747_v53, %v5113_v15  ;;  %v5130_v15 = vunpack.i.h.bf16 %v4329_v37 }
 0x171   :  { %v4342_v25 = vsel %vm988_vm9, %v5118_v7, %v2836_v5  ;;  %v2756_v7 = vunpack.i.l.bf16 %v4160_v40 }
 0x175   :  { %v2865_v12 = vpop.permute.xlu2 %2864 }
 0x176   :  { %v2867_v56 = vunpack.i.h.bf16 %v2865_v12  ;;  %v2866_v54 = vunpack.i.l.bf16 %v2865_v12  ;;  %v4345_v36 = vpop.permute.xlu0 %2849  ;;  %v2845_v53 = vpop.permute.xlu1 %2844  ;;  %v525_v12 = vsel %vm243_vm0, %v2717_v55, %v2816_v42 }
 0x177   :  { %v2847_v11 = vunpack.i.h.bf16 %v2845_v53  ;;  %v2846_v3 = vunpack.i.l.bf16 %v2845_v53  ;;  %v2646_v53 = vunpack.i.l.bf16 %v5203_v60 }
 0x178   :  { %v527_v5 = vsel %vm243_vm0, %v2866_v54, %v2867_v56  ;;  %v2652_v54 = vunpack.i.h.bf16 %v5204_v43 }
 0x179   :  { %554 = vmatpush.msrb.mxu0 %v527_v5  ;;  %v4357_v62 = vsel %vm1247_vm7, %v2847_v11, %v5129_v57  ;;  %v4362_v51 = vsel %vm1247_vm7, %v5130_v15, %v2846_v3  ;;  %v5205_v5 = vunpack.i.h.bf16 %v4049_v24  ;;  %v2851_v3 = vunpack.i.l.bf16 %v4345_v36 }
 0x17a   :  { %5201 = vst [vmem:[#allocation44_spill] sm:$0xff] %v4357_v62  ;;  %v521_v11 = vsel %vm243_vm0, %v2652_v54, %v2756_v7  ;;  %v2727_v24 = vunpack.i.h.bf16 %v4077_v44 }
 0x17b   :  { %5202 = vst [vmem:[#allocation18_spill] sm:$0xff] %v4362_v51  ;;  %555 = vmatpush.msrb.mxu0 %v525_v12  ;;  %v523_v39 = vsel %vm243_vm0, %v2711_v32, %v5205_v5  ;;  %v5206_v51 = vunpack.i.h.bf16 %v5203_v60  ;;  %v2721_v32 = vunpack.i.l.bf16 %v4139_v48  ;;  %v2676_v5 = vunpack.i.l.bf16 %v4053_v0 }
 0x17c   :  { %v635_v54 = vsel %vm628_vm8, %v2727_v24, %v2851_v3 }
 0x17d   :  { %v4369_v55 = vpop.permute.xlu2 %2879  ;;  %556 = vmatpush.msrb.mxu0 %v523_v39  ;;  %v519_v43 = vsel %vm243_vm0, %v2646_v53, %v5206_v51  ;;  %v2817_v51 = vunpack.i.h.bf16 %v4306_v41  ;;  %v2757_v41 = vunpack.i.h.bf16 %v4160_v40 }
 0x17e   :  { %v4371_v45 = vpop.permute.xlu0 %2854  ;;  %v2875_v57 = vpop.permute.xlu1 %2874 }
 0x17f   :  { %557 = vmatpush.msrb.mxu0 %v521_v11  ;;  %v2877_v12 = vunpack.i.h.bf16 %v2875_v57  ;;  %v2876_v15 = vunpack.i.l.bf16 %v2875_v57  ;;  %v5207_v57 = vunpack.i.h.bf16 %v4139_v48  ;;  %v5208_v48 = vunpack.i.h.bf16 %v4053_v0 }
 0x180   :  { %v522_v0 = vsel %vm243_vm0, %v2756_v7, %v2757_v41  ;;  %v5210_v7 = vunpack.i.l.bf16 %v4162_v21 }
 0x181   :  { %558 = vmatpush.msrb.mxu0 %v519_v43  ;;  %v637_v39 = vsel %vm628_vm8, %v2876_v15, %v2877_v12  ;;  %v633_v60 = vsel %vm628_vm8, %v2721_v32, %v5207_v57  ;;  %v4394_v43 = vld [vmem:[#allocation11 + $0x8] sm:$0xff]  ;;  %v629_v32 = vsel %vm628_vm8, %v2676_v5, %v5208_v48 }
 0x182   :  { %2588 = vmatmul.msk.f32.vlgmr.msrb.gmra.mxu0 %vm539_vm10, %v4394_v43 }
 0x183   :  { %663 = vmatpush.msra.mxu0 %v637_v39  ;;  %v526_v39 = vsel %vm243_vm0, %v2816_v42, %v2817_v51  ;;  %v4415_v42 = vld [vmem:[#allocation11] sm:$0xff]  ;;  %v2762_v51 = vunpack.i.h.bf16 %v4162_v21 }
 0x185   :  { %664 = vmatpush.msra.mxu0 %v635_v54  ;;  %v4389_v53 = vpop.permute.xlu2 %2889  ;;  %v2881_v54 = vunpack.i.l.bf16 %v4369_v55 }
 0x186   :  { %v4383_v11 = vpop.permute.xlu0 %2869  ;;  %v4391_v44 = vpop.permute.xlu1 %2884 }
 0x187   :  { %v2871_v15 = vunpack.i.l.bf16 %v4383_v11  ;;  %665 = vmatpush.msra.mxu0 %v633_v60  ;;  %v5209_v60 = vld [vmem:[#allocation23_spill] sm:$0xff]  ;;  %v638_v40 = vsel %vm628_vm8, %v2877_v12, %v2881_v54  ;;  %v632_v12 = vsel %vm628_vm8, %v5210_v7, %v2762_v51 }
 0x189   :  { %666 = vmatpush.msra.mxu0 %v4175_v6  ;;  %v528_v24 = vsel %vm243_vm0, %v2867_v56, %v2871_v15  ;;  %v2852_v56 = vunpack.i.h.bf16 %v4345_v36 }
 0x18a   :  { %574 = vmatpush.msrb.mxu1 %v528_v24 }
 0x18b   :  { %667 = vmatpush.msra.mxu0 %v629_v32  ;;  %v636_v15 = vsel %vm628_vm8, %v2851_v3, %v2852_v56 }
 0x18c   :  { %575 = vmatpush.msrb.mxu1 %v526_v39  ;;  %2590 = vmatmul.msk.f32.vlgmr.msra.gmra.mxu0 %vm539_vm10, %v4415_v42 }
 0x18d   :  { %v2910_v5 = vpop.permute.xlu2 %2909 }
 0x18e   :  { %v4406_v57 = vpop.permute.xlu0 %2894  ;;  %576 = vmatpush.msrb.mxu1 %v4121_v13  ;;  %v4409_v6 = vpop.permute.xlu1 %2899  ;;  %v2912_v41 = vunpack.i.h.bf16 %v2910_v5 }
 0x190   :  { %577 = vmatpush.msrb.mxu1 %v522_v0 }
 0x192   :  { %578 = vmatpush.msrb.mxu1 %v5209_v60  ;;  %v2767_v60 = vunpack.i.h.bf16 %v4200_v38 }
 0x193   :  { %2589 = vmatmul.msk.f32.vlgmr.msrb.gmra.mxu1 %vm539_vm10, %v4394_v43 }
 0x194   :  { %683 = vmatpush.msra.mxu1 %v638_v40 }
 0x195   :  { %v4429_v24 = vpop.permute.xlu2 %2914 }
 0x196   :  { %684 = vmatpush.msra.mxu1 %v636_v15  ;;  %v4423_v36 = vpop.permute.xlu0 %2919  ;;  %v2905_v13 = vpop.permute.xlu1 %2904  ;;  %v2806_v15 = vunpack.i.l.bf16 %v4292_v58 }
 0x197   :  { %v2907_v39 = vunpack.i.h.bf16 %v2905_v13  ;;  %v2906_v21 = vunpack.i.l.bf16 %v2905_v13  ;;  %v5211_v13 = vld [vmem:[#allocation24_spill] sm:$0xff] }
 0x198   :  { %685 = vmatpush.msra.mxu1 %v4146_v22  ;;  %v2657_v62 = vunpack.i.h.bf16 %v5211_v13 }
 0x199   :  { %v743_v7 = vsel %vm243_vm0, %v2906_v21, %v2907_v39 }
 0x19a   :  { %686 = vmatpush.msra.mxu1 %v632_v12 }
 0x19c   :  { %687 = vmatpush.msra.mxu1 %v4064_v50  ;;  %v2911_v50 = vunpack.i.l.bf16 %v2910_v5  ;;  %v2872_v5 = vunpack.i.h.bf16 %v4383_v11  ;;  %v2917_v11 = vunpack.i.h.bf16 %v4429_v24 }
 0x19d   :  { %2591 = vmatmul.msk.f32.vlgmr.msra.gmra.mxu1 %vm539_vm10, %v4415_v42  ;;  %v4438_v32 = vpop.permute.xlu2 %2929 }
 0x19e   :  { %v4434_v3 = vpop.permute.xlu0 %2934  ;;  %v4436_v48 = vpop.permute.xlu1 %2924  ;;  %v744_v12 = vsel %vm243_vm0, %v2907_v39, %v2911_v50  ;;  %v5213_v39 = vunpack.i.h.bf16 %v4292_v58  ;;  %v2887_v50 = vunpack.i.h.bf16 %v4391_v44  ;;  %v2857_v58 = vunpack.i.h.bf16 %v4371_v45 }
 0x1a0   :  { %v739_v21 = vsel %vm243_vm0, %v2806_v15, %v5213_v39  ;;  %v2792_v39 = vunpack.i.h.bf16 %v4260_v23 }
 0x1a6   :  { %v2945_v22 = vpop.permute.xlu0 %2944  ;;  %v4440_v54 = vpop.permute.xlu1 %2939 }
 0x1a7   :  { %v2947_v0 = vunpack.i.h.bf16 %v2945_v22  ;;  %v2946_v56 = vunpack.i.l.bf16 %v2945_v22  ;;  %v2656_v22 = vunpack.i.l.bf16 %v5211_v13 }
 0x1a9   :  { %v745_v40 = vsel %vm243_vm0, %v2912_v41, %v2946_v56  ;;  %v746_v51 = vsel %vm243_vm0, %v2946_v56, %v2947_v0  ;;  %v5212_v41 = vunpack.i.l.bf16 %v4200_v38  ;;  %v2891_v56 = vunpack.i.l.bf16 %v4389_v53 }
 0x1aa   :  { %768 = vmatpush.msrb.mxu0 %v745_v40  ;;  %788 = vmatpush.msrb.mxu1 %v746_v51  ;;  %v2886_v51 = vunpack.i.l.bf16 %v4391_v44  ;;  %v2916_v38 = vunpack.i.l.bf16 %v4429_v24  ;;  %v2856_v44 = vunpack.i.l.bf16 %v4371_v45  ;;  %v737_v15 = vsel %vm243_vm0, %v2872_v5, %v2656_v22 }
 0x1ab   :  { %v742_v0 = vsel %vm243_vm0, %v5212_v41, %v2767_v60  ;;  %v4465_v60 = vpop.permute.xlu2 %2969  ;;  %v738_v24 = vsel %vm243_vm0, %v2656_v22, %v2657_v62  ;;  %v998_v62 = vsel %vm988_vm9, %v2887_v50, %v2891_v56  ;;  %v2681_v22 = vunpack.i.l.bf16 %v4081_v46 }
 0x1ac   :  { %769 = vmatpush.msrb.mxu0 %v743_v7  ;;  %789 = vmatpush.msrb.mxu1 %v744_v12  ;;  %v2922_v12 = vunpack.i.h.bf16 %v4423_v36  ;;  %v997_v45 = vsel %vm988_vm9, %v2886_v51, %v2887_v50  ;;  %v2821_v5 = vunpack.i.l.bf16 %v4284_v10  ;;  %v996_v56 = vsel %vm988_vm9, %v2856_v44, %v2857_v58 }
 0x1ae   :  { %v4455_v40 = vpop.permute.xlu0 %2954  ;;  %770 = vmatpush.msrb.mxu0 %v4265_v33  ;;  %790 = vmatpush.msrb.mxu1 %v742_v0  ;;  %v2950_v7 = vpop.permute.xlu1 %2949  ;;  %v2921_v33 = vunpack.i.l.bf16 %v4423_v36  ;;  %v2682_v0 = vunpack.i.h.bf16 %v4081_v46  ;;  %v5214_v46 = vunpack.i.l.bf16 %v4260_v23  ;;  %v5216_v23 = vunpack.i.h.bf16 %v4284_v10 }
 0x1af   :  { %v2952_v13 = vunpack.i.h.bf16 %v2950_v7  ;;  %v2951_v41 = vunpack.i.l.bf16 %v2950_v7  ;;  %v848_v7 = vsel %vm628_vm8, %v2916_v38, %v2917_v11  ;;  %v2956_v38 = vunpack.i.l.bf16 %v4455_v40 }
 0x1b0   :  { %771 = vmatpush.msrb.mxu0 %v739_v21  ;;  %791 = vmatpush.msrb.mxu1 %v4298_v4  ;;  %v2737_v4 = vunpack.i.h.bf16 %v4101_v20  ;;  %v2731_v21 = vunpack.i.l.bf16 %v4167_v59  ;;  %v2772_v20 = vunpack.i.h.bf16 %v4231_v17  ;;  %v847_v50 = vsel %vm628_vm8, %v5214_v46, %v2792_v39 }
 0x1b1   :  { %v850_v28 = vsel %vm628_vm8, %v2922_v12, %v2951_v41  ;;  %v851_v36 = vsel %vm628_vm8, %v2951_v41, %v2952_v13  ;;  %v849_v12 = vsel %vm628_vm8, %v2917_v11, %v2921_v33  ;;  %v2882_v13 = vunpack.i.h.bf16 %v4369_v55 }
 0x1b2   :  { %772 = vmatpush.msrb.mxu0 %v737_v15  ;;  %792 = vmatpush.msrb.mxu1 %v738_v24  ;;  %v2957_v11 = vunpack.i.h.bf16 %v4455_v40  ;;  %v5215_v55 = vunpack.i.h.bf16 %v4167_v59  ;;  %v2686_v41 = vunpack.i.l.bf16 %v4106_v47  ;;  %v844_v58 = vsel %vm628_vm8, %v2821_v5, %v5216_v23 }
 0x1b3   :  { %873 = vmatpush.msra.mxu2 %v850_v28  ;;  %893 = vmatpush.msra.mxu3 %v851_v36  ;;  %v995_v28 = vsel %vm988_vm9, %v2737_v4, %v2856_v44  ;;  %v2932_v44 = vunpack.i.h.bf16 %v4438_v32  ;;  %v4507_v15 = vpop.permute.xlu2 %2974  ;;  %v842_v59 = vsel %vm628_vm8, %v2882_v13, %v2681_v22  ;;  %v5217_v10 = vunpack.i.l.bf16 %v4231_v17 }
 0x1b4   :  { %1023 = vmatpush.msra.mxu0 %v997_v45  ;;  %1043 = vmatpush.msra.mxu1 %v998_v62  ;;  %v993_v33 = vsel %vm988_vm9, %v2731_v21, %v5215_v55  ;;  %v2897_v39 = vunpack.i.h.bf16 %v4406_v57  ;;  %v2927_v36 = vunpack.i.h.bf16 %v4436_v48  ;;  %v2926_v4 = vunpack.i.l.bf16 %v4436_v48 }
 0x1b5   :  { %874 = vmatpush.msra.mxu2 %v848_v7  ;;  %894 = vmatpush.msra.mxu3 %v849_v12  ;;  %v992_v24 = vsel %vm988_vm9, %v5217_v10, %v2772_v20  ;;  %v2896_v21 = vunpack.i.l.bf16 %v4406_v57  ;;  %v1107_v17 = vsel %vm988_vm9, %v2932_v44, %v2956_v38  ;;  %v2797_v45 = vunpack.i.h.bf16 %v4290_v52 }
 0x1b6   :  { %1024 = vmatpush.msra.mxu0 %v995_v28  ;;  %1044 = vmatpush.msra.mxu1 %v996_v56  ;;  %v4493_v51 = vpop.permute.xlu0 %2959  ;;  %v4509_v40 = vpop.permute.xlu1 %2964  ;;  %v2831_v57 = vunpack.i.l.bf16 %v4331_v19  ;;  %v1105_v62 = vsel %vm988_vm9, %v2926_v4, %v2927_v36  ;;  %v2741_v5 = vunpack.i.l.bf16 %v4137_v27  ;;  %v2692_v12 = vunpack.i.h.bf16 %v4051_v26 }
 0x1b7   :  { %875 = vmatpush.msra.mxu2 %v4316_v35  ;;  %895 = vmatpush.msra.mxu3 %v847_v50  ;;  %v843_v35 = vsel %vm628_vm8, %v2681_v22, %v2682_v0  ;;  %v1108_v0 = vsel %vm988_vm9, %v2956_v38, %v2957_v11  ;;  %v2691_v20 = vunpack.i.l.bf16 %v4051_v26  ;;  %v5219_v13 = vunpack.i.l.bf16 %v4290_v52 }
 0x1b8   :  { %1025 = vmatpush.msra.mxu0 %v993_v33  ;;  %1045 = vmatpush.msra.mxu1 %v4181_v8  ;;  %v2931_v8 = vunpack.i.l.bf16 %v4438_v32  ;;  %v5218_v32 = vunpack.i.h.bf16 %v4106_v47  ;;  %v2777_v56 = vunpack.i.h.bf16 %v4192_v49  ;;  %v5220_v46 = vunpack.i.l.bf16 %v4325_v16 }
 0x1b9   :  { %876 = vmatpush.msra.mxu2 %v844_v58  ;;  %896 = vmatpush.msra.mxu3 %v4321_v30  ;;  %v2901_v30 = vunpack.i.l.bf16 %v4409_v6  ;;  %v1104_v28 = vsel %vm988_vm9, %v5219_v13, %v2797_v45  ;;  %v5221_v26 = vunpack.i.h.bf16 %v4331_v19  ;;  %v2972_v52 = vunpack.i.h.bf16 %v4465_v60 }
 0x1ba   :  { %1026 = vmatpush.msra.mxu0 %v4242_v31  ;;  %1046 = vmatpush.msra.mxu1 %v992_v24  ;;  %v989_v48 = vsel %vm988_vm9, %v2686_v41, %v5218_v32  ;;  %v2862_v31 = vunpack.i.h.bf16 %v4325_v16  ;;  %v1106_v22 = vsel %vm988_vm9, %v2927_v36, %v2931_v8  ;;  %v2971_v11 = vunpack.i.l.bf16 %v4465_v60  ;;  %v5225_v8 = vld [vmem:[#allocation36_spill] sm:$0xff] }
 0x1bb   :  { %877 = vmatpush.msra.mxu2 %v842_v59  ;;  %897 = vmatpush.msra.mxu3 %v843_v35  ;;  %v1257_v7 = vsel %vm1247_vm7, %v2897_v39, %v2901_v30  ;;  %v2942_v38 = vunpack.i.h.bf16 %v4440_v54  ;;  %v4562_v55 = vpop.permute.xlu2 %2989  ;;  %v5222_v16 = vunpack.i.h.bf16 %v4137_v27  ;;  %v2696_v19 = vunpack.i.l.bf16 %v4079_v18  ;;  %v942_v59 = vld [vmem:[#allocation11 + $0x10] sm:$0xff] }
 0x1bc   :  { %1027 = vmatpush.msra.mxu0 %v989_v48  ;;  %1047 = vmatpush.msra.mxu1 %v4126_v2  ;;  %v1256_v2 = vsel %vm1247_vm7, %v2896_v21, %v2897_v39  ;;  %v1255_v50 = vsel %vm1247_vm7, %v5220_v46, %v2862_v31  ;;  %v1100_v33 = vsel %vm988_vm9, %v2691_v20, %v2692_v12  ;;  %v5223_v41 = vunpack.i.l.bf16 %v4192_v49  ;;  %v5233_v48 = vld [vmem:[#allocation25_spill] sm:$0xff]  ;;  %v5234_v31 = vld [vmem:[#allocation26_spill] sm:$0xff]  ;;  %v1201_v12 = vld [vmem:[#allocation11 + $0x18] sm:$0xff] }
 0x1bd   :  { %1130 = vmatpush.msrb.mxu2 %v1107_v17  ;;  %1150 = vmatpush.msrb.mxu3 %v1108_v0  ;;  %v2936_v27 = vunpack.i.l.bf16 %v4434_v3  ;;  %v2941_v58 = vunpack.i.l.bf16 %v4440_v54  ;;  %v1366_v49 = vsel %vm1247_vm7, %v2942_v38, %v2971_v11  ;;  %v1367_v44 = vsel %vm1247_vm7, %v2971_v11, %v2972_v52  ;;  %v5228_v17 = vld [vmem:[#allocation44_spill] sm:$0xff]  ;;  %v5229_v0 = vld [vmem:[#allocation33_spill] sm:$0xff] }
 0x1be   :  { %2592 = vmatmul.msk.f32.vlgmr.msrb.gmra.mxu0 %vm539_vm10, %v4394_v43  ;;  %2593 = vmatmul.msk.f32.vlgmr.msrb.gmra.mxu1 %vm539_vm10, %v4394_v43  ;;  %v4539_v47 = vpop.permute.xlu0 %2979  ;;  %v2892_v43 = vunpack.i.h.bf16 %v4389_v53  ;;  %v1101_v53 = vsel %vm988_vm9, %v2831_v57, %v5221_v26  ;;  %v1251_v23 = vsel %vm1247_vm7, %v5223_v41, %v2777_v56  ;;  %v2841_v35 = vunpack.i.l.bf16 %v4329_v37  ;;  %v4645_v46 = vld [vmem:[%s5040_s0 + $0x8] sm:$0xff] }
 0x1bf   :  { %1131 = vmatpush.msrb.mxu2 %v1105_v62  ;;  %1151 = vmatpush.msrb.mxu3 %v1106_v22  ;;  %v2702_v24 = vunpack.i.h.bf16 %v4016_v63  ;;  %v2902_v39 = vunpack.i.h.bf16 %v4409_v6  ;;  %v5227_v36 = vunpack.i.l.bf16 %v4225_v29  ;;  %v5231_v6 = vunpack.i.h.bf16 %v4329_v37  ;;  %v5235_v22 = vld [vmem:[#allocation27_spill] sm:$0xff]  ;;  %v5236_v37 = vld [vmem:[#allocation28_spill] sm:$0xff] }
 0x1c0   :  { %1282 = vmatpush.msrb.mxu0 %v1256_v2  ;;  %1302 = vmatpush.msrb.mxu1 %v1257_v7  ;;  %v1099_v60 = vsel %vm988_vm9, %v2892_v43, %v2691_v20  ;;  %v2976_v2 = vunpack.i.l.bf16 %v4507_v15  ;;  %v2981_v7 = vunpack.i.l.bf16 %v4539_v47  ;;  %v5237_v20 = vld [vmem:[#allocation42_spill] sm:$0xff]  ;;  %v5238_v43 = vld [vmem:[#allocation43_spill] sm:$0xff]  ;;  %v2967_v13 = vunpack.i.h.bf16 %v4509_v40 }
 0x1c1   :  { %1132 = vmatpush.msrb.mxu2 %v4311_v1  ;;  %1152 = vmatpush.msrb.mxu3 %v1104_v28  ;;  %v4564_v1 = vpop.permute.xlu1 %2984  ;;  %v1360_v45 = vsel %vm1247_vm7, %v2841_v35, %v5231_v6  ;;  %v2966_v28 = vunpack.i.l.bf16 %v4509_v40  ;;  %v2962_v56 = vunpack.i.h.bf16 %v4493_v51  ;;  %v2961_v52 = vunpack.i.l.bf16 %v4493_v51  ;;  %v5243_v51 = vld [vmem:[#allocation29_spill] sm:$0xff] }
 0x1c2   :  { %1283 = vmatpush.msrb.mxu0 %v4337_v14  ;;  %1303 = vmatpush.msrb.mxu1 %v1255_v50  ;;  %v1252_v14 = vsel %vm1247_vm7, %v2741_v5, %v5222_v16  ;;  %v2977_v5 = vunpack.i.h.bf16 %v4507_v15  ;;  %v4639_v15 = vld [vmem:[%s5040_s0] sm:$0xff]  ;;  %v5240_v16 = vld [vmem:[#allocation40_spill] sm:$0xff] }
 0x1c3   :  { %1133 = vmatpush.msrb.mxu2 %v1101_v53  ;;  %1153 = vmatpush.msrb.mxu3 %v4342_v25  ;;  %v2937_v25 = vunpack.i.h.bf16 %v4434_v3  ;;  %v2802_v3 = vunpack.i.h.bf16 %v4225_v29  ;;  %v4607_v30 = vpop.permute.xlu2 %3004  ;;  %v5232_v29 = vld [vmem:[#allocation18_spill] sm:$0xff]  ;;  %v5239_v50 = vld [vmem:[#allocation51_spill] sm:$0xff] }
 0x1c4   :  { %1284 = vmatpush.msrb.mxu0 %v1252_v14  ;;  %1304 = vmatpush.msrb.mxu1 %v4217_v61  ;;  %v2752_v26 = vunpack.i.h.bf16 %v5239_v50  ;;  %v2751_v40 = vunpack.i.l.bf16 %v5239_v50  ;;  %v5241_v14 = vld [vmem:[#allocation41_spill] sm:$0xff] }
 0x1c5   :  { %1134 = vmatpush.msrb.mxu2 %v1099_v60  ;;  %1154 = vmatpush.msrb.mxu3 %v1100_v33  ;;  %v1365_v10 = vsel %vm1247_vm7, %v2937_v25, %v2941_v58  ;;  %v1363_v4 = vsel %vm1247_vm7, %v5227_v36, %v2802_v3  ;;  %v1633_v60 = vsel %vm1165_vm6, %v2977_v5, %v2981_v7  ;;  %v5242_v33 = vld [vmem:[#allocation35_spill] sm:$0xff]  ;;  %v3006_v36 = vunpack.i.l.bf16 %v4607_v30 }
 0x1c6   :  { %1285 = vmatpush.msrb.mxu0 %v4211_v9  ;;  %1305 = vmatpush.msrb.mxu1 %v1251_v23  ;;  %v4581_v61 = vpop.permute.xlu0 %2994  ;;  %v5224_v9 = vunpack.i.h.bf16 %v4079_v18  ;;  %v2701_v18 = vunpack.i.l.bf16 %v4016_v63  ;;  %v5230_v63 = vld [vmem:[#allocation34_spill] sm:$0xff]  ;;  %v2787_v41 = vunpack.i.h.bf16 %v5242_v33  ;;  %v1631_v58 = vsel %vm1165_vm6, %v2966_v28, %v2967_v13 }
 0x1c7   :  { %2594 = vmatmul.msk.f32.vlgmr.msra.gmra.mxu2 %vm539_vm10, %v4415_v42  ;;  %2595 = vmatmul.msk.f32.vlgmr.msra.gmra.mxu3 %vm539_vm10, %v4415_v42  ;;  %v1364_v42 = vsel %vm1247_vm7, %v2936_v27, %v2937_v25  ;;  %v5244_v25 = vld [vmem:[#allocation30_spill] sm:$0xff]  ;;  %v1630_v27 = vsel %vm1165_vm6, %v2962_v56, %v2966_v28  ;;  %v1629_v35 = vsel %vm1165_vm6, %v2752_v26, %v2961_v52  ;;  %v2996_v52 = vunpack.i.l.bf16 %v4581_v61 }
 0x1c8   :  { %1389 = vmatpush.msra.mxu2 %v1366_v49  ;;  %1409 = vmatpush.msra.mxu3 %v1367_v44  ;;  %v1248_v54 = vsel %vm1247_vm7, %v2696_v19, %v5224_v9  ;;  %v1358_v57 = vsel %vm1247_vm7, %v2902_v39, %v2701_v18  ;;  %v1359_v62 = vsel %vm1247_vm7, %v2701_v18, %v2702_v24  ;;  %v5245_v9 = vld [vmem:[#allocation31_spill] sm:$0xff]  ;;  %v3007_v39 = vunpack.i.h.bf16 %v4607_v30 }
 0x1c9   :  { %1286 = vmatpush.msrb.mxu0 %v1248_v54  ;;  %1306 = vmatpush.msrb.mxu1 %v4087_v34  ;;  %v5226_v34 = vld [vmem:[#allocation38_spill] sm:$0xff]  ;;  %v4609_v21 = vpop.permute.xlu1 %2999  ;;  %v1632_v19 = vsel %vm1165_vm6, %v2976_v2, %v2977_v5  ;;  %v5246_v54 = vld [vmem:[#allocation32_spill] sm:$0xff]  ;;  %v5247_v24 = vld [vmem:[#allocation47_spill] sm:$0xff]  ;;  %v2997_v5 = vunpack.i.h.bf16 %v4581_v61 }
 0x1ca   :  { %2596 = vmatmul.msk.f32.vlgmr.msra.gmra.mxu0 %vm539_vm10, %v942_v59  ;;  %2597 = vmatmul.msk.f32.vlgmr.msra.gmra.mxu1 %vm539_vm10, %v942_v59  ;;  %v2706_v18 = vunpack.i.l.bf16 %v5247_v24  ;;  %v5249_v2 = vld [vmem:[#allocation37_spill] sm:$0xff]  ;;  %v3001_v13 = vunpack.i.l.bf16 %v4609_v21 }
 0x1cb   :  { %1390 = vmatpush.msra.mxu2 %v1364_v42  ;;  %1410 = vmatpush.msra.mxu3 %v1365_v10  ;;  %v4653_v11 = vpop.permute.xlu2 %1796 }
 0x1cc   :  { %1436 = vmatpush.msra.mxu0 %v5225_v8  ;;  %1456 = vmatpush.msra.mxu1 %v5226_v34  ;;  %v1807_v30 = vmul.f32 %v4653_v11, %v5235_v22 }
 0x1cd   :  { %1391 = vmatpush.msra.mxu2 %v5228_v17  ;;  %1411 = vmatpush.msra.mxu3 %v1363_v4  ;;  %v5248_v4 = vunpack.i.l.bf16 %v5242_v33  ;;  %v2982_v33 = vunpack.i.h.bf16 %v4539_v47 }
 0x1ce   :  { %1437 = vmatpush.msra.mxu0 %v5229_v0  ;;  %1457 = vmatpush.msra.mxu1 %v5230_v63  ;;  %v4617_v32 = vpop.permute.xlu0 %3009 }
 0x1cf   :  { %1392 = vmatpush.msra.mxu2 %v1360_v45  ;;  %1412 = vmatpush.msra.mxu3 %v5232_v29  ;;  %v3012_v44 = vunpack.i.h.bf16 %v4617_v32  ;;  %v1627_v17 = vsel %vm1165_vm6, %v5248_v4, %v2787_v41  ;;  %v3011_v6 = vunpack.i.l.bf16 %v4617_v32  ;;  %v4687_v45 = vld [vmem:[%s5040_s0 + $0x10] sm:$0xff]  ;;  %v4693_v29 = vld [vmem:[%s5040_s0 + $0x18] sm:$0xff]  ;;  %v1804_v32 = vmul.f32 %v4639_v15, %v4653_v11  ;;  %s3416_s0 = smov 112  }
 0x1d0   :  { %1438 = vmatpush.msra.mxu0 %v5233_v48  ;;  %1458 = vmatpush.msra.mxu1 %v5234_v31  ;;  %v2986_v41 = vunpack.i.l.bf16 %v4564_v1 }
 0x1d1   :  { %1393 = vmatpush.msra.mxu2 %v1358_v57  ;;  %1413 = vmatpush.msra.mxu3 %v1359_v62  ;;  %v3015_v38 = vpop.permute.xlu1 %3014  ;;  %v3002_v62 = vunpack.i.h.bf16 %v4609_v21 }
 0x1d2   :  { %1439 = vmatpush.msra.mxu0 %v5235_v22  ;;  %1459 = vmatpush.msra.mxu1 %v5236_v37  ;;  %v3016_v49 = vunpack.i.l.bf16 %v3015_v38  ;;  %v3017_v3 = vunpack.i.h.bf16 %v3015_v38  ;;  %v1740_v38 = vsel %vm1165_vm6, %v3006_v36, %v3007_v39 }
 0x1d3   :  { %2598 = vmatmul.msk.f32.vlgmr.msrb.gmra.mxu2 %vm539_vm10, %v942_v59  ;;  %2599 = vmatmul.msk.f32.vlgmr.msrb.gmra.mxu3 %vm539_vm10, %v942_v59  ;;  %v1628_v59 = vsel %vm1165_vm6, %v2751_v40, %v2752_v26  ;;  %v2992_v26 = vunpack.i.h.bf16 %v4562_v55  ;;  %v2991_v40 = vunpack.i.l.bf16 %v4562_v55  ;;  %v2987_v55 = vunpack.i.h.bf16 %v4564_v1 }
 0x1d4   :  { %1478 = vmatpush.msrb.mxu2 %v5237_v20  ;;  %1498 = vmatpush.msrb.mxu3 %v5238_v43  ;;  %v1742_v7 = vsel %vm1165_vm6, %v3012_v44, %v3016_v49  ;;  %v1743_v28 = vsel %vm1165_vm6, %v3016_v49, %v3017_v3  ;;  %v1739_v61 = vsel %vm1165_vm6, %v3001_v13, %v3002_v62 }
 0x1d5   :  { %1440 = vmatpush.msra.mxu0 %v4639_v15  ;;  %1460 = vmatpush.msra.mxu1 %v4645_v46  ;;  %v1737_v47 = vsel %vm1165_vm6, %v2992_v26, %v2996_v52  ;;  %v1734_v1 = vsel %vm1165_vm6, %v2982_v33, %v2986_v41  ;;  %v1735_v44 = vsel %vm1165_vm6, %v2986_v41, %v2987_v55  ;;  %v5257_v33 = vld [vmem:[#allocation49_spill] sm:$0xff]  ;;  %v5258_v55 = vpack.i.bf16 0.0, %v5226_v34 }
 0x1d6   :  { %2600 = vmatmul.msk.f32.vlgmr.msrb.gmra.mxu0 %vm539_vm10, %v1201_v12  ;;  %2601 = vmatmul.msk.f32.vlgmr.msrb.gmra.mxu1 %vm539_vm10, %v1201_v12  ;;  %v1799_v53 = vpop.permute.xlu0 %1798  ;;  %v1822_v62 = vmul.f32 %v4653_v11, %v5245_v9  ;;  %v3138_v41 = vpack.i.bf16 %v4693_v29, %v4687_v45 }
 0x1d7   :  { %1479 = vmatpush.msrb.mxu2 %v5240_v16  ;;  %1499 = vmatpush.msrb.mxu3 %v5241_v14  ;;  %v4662_v23 = vsel %vm988_vm9, %v4653_v11, %v1799_v53  ;;  %v4673_v42 = vmul.f32 0.0, %v1799_v53  ;;  %v5250_v53 = vunpack.i.h.bf16 %v5247_v24  ;;  %v1810_v24 = vmul.f32 %v4653_v11, %v5233_v48 }
 0x1d8   :  { %1658 = vmatpush.msrb.mxu0 %v1632_v19  ;;  %1678 = vmatpush.msrb.mxu1 %v1633_v60  ;;  %v1808_v10 = vmul.f32 %v4662_v23, %v5236_v37  ;;  %v1805_v57 = vmul.f32 %v4645_v46, %v4662_v23  ;;  %v1741_v19 = vsel %vm1165_vm6, %v3007_v39, %v3011_v6 }
 0x1d9   :  { %1480 = vmatpush.msrb.mxu2 %v5243_v51  ;;  %1500 = vmatpush.msrb.mxu3 %v5244_v25  ;;  %v3023_v56 = vpack.i.bf16 %v1807_v30, %v4673_v42  ;;  %v1624_v21 = vsel %vm1165_vm6, %v2706_v18, %v5250_v53  ;;  %v1814_v49 = vmul.f32 %v4662_v23, %v5230_v63 }
 0x1da   :  { %1659 = vmatpush.msrb.mxu0 %v1630_v27  ;;  %1679 = vmatpush.msrb.mxu1 %v1631_v58  ;;  %v3028_v50 = vpack.i.bf16 %v4673_v42, %v1808_v10  ;;  %v3018_v60 = vpack.i.bf16 %v1805_v57, %v1804_v32  ;;  %v1738_v27 = vsel %vm1165_vm6, %v2997_v5, %v3001_v13 }
 0x1db   :  { %1481 = vmatpush.msrb.mxu2 %v5245_v9  ;;  %1501 = vmatpush.msrb.mxu3 %v5246_v54  ;;  %v1736_v58 = vsel %vm1165_vm6, %v2991_v40, %v2992_v26  ;;  %v1811_v3 = vmul.f32 %v4662_v23, %v5234_v31  ;;  %v3043_v10 = vpack.i.bf16 %v4673_v42, %v1814_v49  ;;  %v5262_v49 = vpack.i.bf16 0.0, %v5234_v31 }
 0x1dc   :  { %1660 = vmatpush.msrb.mxu0 %v1628_v59  ;;  %1680 = vmatpush.msrb.mxu1 %v1629_v35  ;;  %v1813_v59 = vmul.f32 %v4653_v11, %v5229_v0  ;;  %v1819_v39 = vmul.f32 %v4687_v45, %v4653_v11  ;;  %v1820_v36 = vmul.f32 %v4693_v29, %v4662_v23 }
 0x1dd   :  { %1482 = vmatpush.msrb.mxu2 %v4687_v45  ;;  %1502 = vmatpush.msrb.mxu3 %v4693_v29  ;;  %v3033_v18 = vpack.i.bf16 %v1811_v3, %v1810_v24  ;;  %v1817_v4 = vmul.f32 %v4662_v23, %v5226_v34  ;;  %v1816_v30 = vmul.f32 %v4653_v11, %v5225_v8  ;;  %v1421_v3 = vld [vmem:[#allocation11 + $0x20] sm:$0xff] }
 0x1de   :  { %1661 = vmatpush.msrb.mxu0 %v5249_v2  ;;  %1681 = vmatpush.msrb.mxu1 %v1627_v17  ;;  %v3038_v35 = vpack.i.bf16 %v1813_v59, %v4673_v42  ;;  %v3053_v17 = vpack.i.bf16 %v1819_v39, %v4673_v42  ;;  %v3058_v6 = vpack.i.bf16 %v4673_v42, %v1820_v36  ;;  %v5252_v2 = vld [vmem:[#allocation20_spill] sm:$0xff]  ;;  %v1578_v36 = vld [vmem:[#allocation11 + $0x28] sm:$0xff] }
 0x1df   :  { %2602 = vmatmul.msk.f32.vlgmr.msra.gmra.mxu2 %vm539_vm10, %v1201_v12  ;;  %2603 = vmatmul.msk.f32.vlgmr.msra.gmra.mxu3 %vm539_vm10, %v1201_v12  ;;  %v5251_v12 = vld [vmem:[#allocation52_spill] sm:$0xff]  ;;  %v3048_v32 = vpack.i.bf16 %v1817_v4, %v1816_v30  ;;  %v1823_v57 = vmul.f32 %v4662_v23, %v5246_v54  ;;  %v1826_v13 = vmul.f32 %v4662_v23, %v5244_v25 }
 0x1e0   :  { %1765 = vmatpush.msra.mxu2 %v1742_v7  ;;  %1785 = vmatpush.msra.mxu3 %v1743_v28  ;;  %v5253_v7 = vld [vmem:[#allocation19_spill] sm:$0xff]  ;;  %v1832_v28 = vmul.f32 %v4662_v23, %v5238_v43  ;;  %v1825_v40 = vmul.f32 %v4653_v11, %v5243_v51 }
 0x1e1   :  { %1662 = vmatpush.msrb.mxu0 %v1624_v21  ;;  %1682 = vmatpush.msrb.mxu1 %v5251_v12  ;;  %v3063_v5 = vpack.i.bf16 %v1823_v57, %v1822_v62  ;;  %v1829_v21 = vmul.f32 %v4662_v23, %v5241_v14  ;;  %v1828_v12 = vmul.f32 %v4653_v11, %v5240_v16  ;;  %v5256_v23 = vld [vmem:[#allocation45_spill] sm:$0xff] }
 0x1e2   :  { %1766 = vmatpush.msra.mxu2 %v1740_v38  ;;  %1786 = vmatpush.msra.mxu3 %v1741_v19  ;;  %v3068_v53 = vpack.i.bf16 %v1825_v40, %v4673_v42  ;;  %v5254_v38 = vld [vmem:[#allocation50_spill] sm:$0xff] }
 0x1e3   :  { %3024 = vrot.lane.b32.xlu2 %v3023_v56, %s3411_s9  ;;  %3029 = vrot.lane.b32.xlu0 %v3028_v50, %s3411_s9  ;;  %v1831_v56 = vmul.f32 %v4653_v11, %v5237_v20  ;;  %v3073_v50 = vpack.i.bf16 %v4673_v42, %v1826_v13  ;;  %v3088_v52 = vpack.i.bf16 %v4673_v42, %v1829_v21 }
 0x1e4   :  { %1767 = vmatpush.msra.mxu2 %v1738_v27  ;;  %1787 = vmatpush.msra.mxu3 %v1739_v61  ;;  %v3083_v19 = vpack.i.bf16 %v1828_v12, %v4673_v42  ;;  %v3123_v11 = vpack.i.bf16 %v5246_v54, %v5245_v9  ;;  %v5259_v42 = vld [vmem:[#allocation48_spill] sm:$0xff]  ;;  %v3133_v27 = vpack.i.bf16 0.0, %v5230_v63  ;;  %v5260_v61 = vmov 0.0  }
 0x1e5   :  { %3019 = vrot.lane.b32.xlu1 %v3018_v60, %s3411_s9  ;;  %v3078_v26 = vpack.i.bf16 %v1832_v28, %v1831_v56  ;;  %v5255_v60 = vpack.i.bf16 0.0, %v5241_v14  ;;  %2604 = vmatmul.msk.f32.vlgmr.msra.gmra.mxu0 %vm539_vm10, %v1421_v3 }
 0x1e6   :  { %1768 = vmatpush.msra.mxu2 %v1736_v58  ;;  %1788 = vmatpush.msra.mxu3 %v1737_v47  ;;  %v3128_v58 = vpack.i.bf16 %v5229_v0, %v5260_v61  ;;  %v5261_v47 = vld [vmem:[#allocation39_spill] sm:$0xff] }
 0x1e7   :  { %2605 = vmatmul.msk.f32.vlgmr.msra.gmra.mxu1 %vm539_vm10, %v1421_v3  ;;  %2606 = vmatmul.msk.f32.vlgmr.msrb.gmra.mxu2 %vm539_vm10, %v1421_v3 }
 0x1e8   :  { %1769 = vmatpush.msra.mxu2 %v1734_v1  ;;  %1789 = vmatpush.msra.mxu3 %v1735_v44  ;;  %v3173_v44 = vpack.i.bf16 %v4639_v15, %v5260_v61 }
 0x1e9   :  { %2607 = vmatmul.msk.f32.vlgmr.msrb.gmra.mxu3 %vm539_vm10, %v1421_v3 }
 0x1eb   :  { %3039 = vrot.lane.b32.xlu2 %v3038_v35, %s3411_s9  ;;  %3044 = vrot.lane.b32.xlu0 %v3043_v10, %s3411_s9  ;;  %v3188_v35 = vpack.i.bf16 0.0, %v4645_v46 }
 0x1ed   :  { %3034 = vrot.lane.b32.xlu1 %v3033_v18, %s3411_s9  ;;  %2608 = vmatmul.msk.f32.vlgmr.msrb.gmra.mxu0 %vm539_vm10, %v1578_v36 }
 0x1ef   :  { %2609 = vmatmul.msk.f32.vlgmr.msrb.gmra.mxu1 %vm539_vm10, %v1578_v36  ;;  %2610 = vmatmul.msk.f32.vlgmr.msra.gmra.mxu2 %vm539_vm10, %v1578_v36 }
 0x1f1   :  { %2611 = vmatmul.msk.f32.vlgmr.msra.gmra.mxu3 %vm539_vm10, %v1578_v36 }
 0x1f3   :  { %3054 = vrot.lane.b32.xlu2 %v3053_v17, %s3411_s9  ;;  %3059 = vrot.lane.b32.xlu0 %v3058_v6, %s3411_s9 }
 0x1f5   :  { %3049 = vrot.lane.b32.xlu1 %v3048_v32, %s3411_s9 }
 0x1fb   :  { %2275 = vrot.lane.b32.xlu2 %v5252_v2, %s3414_s3  ;;  %3064 = vrot.lane.b32.xlu0 %v3063_v5, %s3411_s9 }
 0x1fd   :  { %2273 = vrot.lane.b32.xlu1 %v5253_v7, %s3414_s3 }
 0x203   :  { %3074 = vrot.lane.b32.xlu2 %v3073_v50, %s3411_s9  ;;  %3079 = vrot.lane.b32.xlu0 %v3078_v26, %s3411_s9 }
 0x205   :  { %3069 = vrot.lane.b32.xlu1 %v3068_v53, %s3411_s9 }
 0x20b   :  { %3089 = vrot.lane.b32.xlu2 %v3088_v52, %s3411_s9  ;;  %3094 = vrot.lane.b32.xlu0 %v5254_v38, %s3416_s0 }
 0x20d   :  { %3084 = vrot.lane.b32.xlu1 %v3083_v19, %s3411_s9  ;;  %s2554_s9 = sshll.u32 %s5050_s10, 4  ;;  %s2555_s9 = int_to_ptr.hbm [resolvable:$true] %s2554_s9 }
 0x213   :  { %3104 = vrot.lane.b32.xlu2 %v5255_v60, %s3416_s0  ;;  %3109 = vrot.lane.b32.xlu0 %v5256_v23, %s3416_s0 }
 0x215   :  { %3099 = vrot.lane.b32.xlu1 %v5257_v33, %s3416_s0 }
 0x21b   :  { %3119 = vrot.lane.b32.xlu2 %v5258_v55, %s3416_s0  ;;  %3124 = vrot.lane.b32.xlu0 %v3123_v11, %s3416_s0 }
 0x21d   :  { %3114 = vrot.lane.b32.xlu1 %v5259_v42, %s3416_s0 }
 0x223   :  { %3134 = vrot.lane.b32.xlu2 %v3133_v27, %s3416_s0  ;;  %3139 = vrot.lane.b32.xlu0 %v3138_v41, %s3416_s0 }
 0x225   :  { %3129 = vrot.lane.b32.xlu1 %v3128_v58, %s3416_s0 }
 0x22d   :  { %3144 = vrot.lane.b32.xlu1 %v5261_v47, %s3416_s0 }
 0x235   :  { %3159 = vrot.lane.b32.xlu1 %v5262_v49, %s3416_s0 }
 0x23d   :  { %v4819_v1 = vpop.permute.xlu2 %3024  ;;  %3174 = vrot.lane.b32.xlu1 %v3173_v44, %s3416_s0 }
 0x23e   :  { %v3027_v19 = vunpack.i.h.bf16 %v4819_v1  ;;  %v3026_v27 = vunpack.i.l.bf16 %v4819_v1 }
 0x245   :  { %v3040_v59 = vpop.permute.xlu2 %3039  ;;  %3189 = vrot.lane.b32.xlu1 %v3188_v35, %s3416_s0 }
 0x246   :  { %v3042_v28 = vunpack.i.h.bf16 %v3040_v59  ;;  %v3041_v52 = vunpack.i.l.bf16 %v3040_v59 }
 0x24d   :  { %v4829_v10 = vpop.permute.xlu2 %3054 }
 0x24e   :  { %v3056_v57 = vunpack.i.l.bf16 %v4829_v10 }
 0x255   :  { %v2276_v24 = vpop.permute.xlu2 %2275  ;;  %v3030_v18 = vpop.permute.xlu0 %3029 }
 0x256   :  { %v3032_v53 = vunpack.i.h.bf16 %v3030_v18  ;;  %v3031_v21 = vunpack.i.l.bf16 %v3030_v18  ;;  %v4848_v60 = vmul.f32 0.0, %v2276_v24 }
 0x257   :  { %v3020_v39 = vpop.permute.xlu1 %3019 }
 0x258   :  { %v3022_v11 = vunpack.i.h.bf16 %v3020_v39  ;;  %v3021_v55 = vunpack.i.l.bf16 %v3020_v39  ;;  %v1883_v58 = vsel %vm906_vm5, %v3027_v19, %v3031_v21  ;;  %v1884_v47 = vsel %vm906_vm5, %v3031_v21, %v3032_v53 }
 0x25a   :  { %v1881_v35 = vsel %vm906_vm5, %v3021_v55, %v3022_v11  ;;  %v1882_v18 = vsel %vm906_vm5, %v3022_v11, %v3026_v27 }
 0x25d   :  { %v4836_v4 = vpop.permute.xlu2 %3074  ;;  %v3045_v17 = vpop.permute.xlu0 %3044 }
 0x25e   :  { %v3047_v5 = vunpack.i.h.bf16 %v3045_v17  ;;  %v3046_v2 = vunpack.i.l.bf16 %v3045_v17 }
 0x25f   :  { %v3035_v6 = vpop.permute.xlu1 %3034 }
 0x260   :  { %v3037_v56 = vunpack.i.h.bf16 %v3035_v6  ;;  %v3036_v50 = vunpack.i.l.bf16 %v3035_v6  ;;  %v1887_v12 = vsel %vm906_vm5, %v3042_v28, %v3046_v2  ;;  %v1888_v38 = vsel %vm906_vm5, %v3046_v2, %v3047_v5  ;;  %v5263_v28 = vld [vmem:[#allocation46_spill] sm:$0xff] }
 0x262   :  { %v1885_v42 = vsel %vm906_vm5, %v3036_v50, %v3037_v56  ;;  %v1886_v41 = vsel %vm906_vm5, %v3037_v56, %v3041_v52 }
 0x265   :  { %v4838_v30 = vpop.permute.xlu2 %3089  ;;  %v4840_v32 = vpop.permute.xlu0 %3059 }
 0x266   :  { %v3092_v21 = vunpack.i.h.bf16 %v4838_v30  ;;  %v3091_v52 = vunpack.i.l.bf16 %v4838_v30 }
 0x267   :  { %v3050_v62 = vpop.permute.xlu1 %3049 }
 0x268   :  { %v3052_v7 = vunpack.i.h.bf16 %v3050_v62  ;;  %v3051_v13 = vunpack.i.l.bf16 %v3050_v62 }
 0x26a   :  { %v1889_v26 = vsel %vm906_vm5, %v3051_v13, %v3052_v7  ;;  %v1890_v40 = vsel %vm906_vm5, %v3052_v7, %v3056_v57 }
 0x26b   :  { %1915 = vmatpush.msra.mxu0 %v1889_v26  ;;  %1935 = vmatpush.msra.mxu1 %v1890_v40 }
 0x26d   :  { %1916 = vmatpush.msra.mxu0 %v1887_v12  ;;  %1936 = vmatpush.msra.mxu1 %v1888_v38  ;;  %v4850_v23 = vpop.permute.xlu2 %3104  ;;  %v4852_v33 = vpop.permute.xlu0 %3064 }
 0x26e   :  { %v3066_v30 = vunpack.i.l.bf16 %v4852_v33 }
 0x26f   :  { %v4857_v61 = vpop.permute.xlu1 %2273  ;;  %1917 = vmatpush.msra.mxu0 %v1885_v42  ;;  %1937 = vmatpush.msra.mxu1 %v1886_v41  ;;  %v3067_v41 = vunpack.i.h.bf16 %v4852_v33 }
 0x270   :  { %v2305_v49 = vmul.f32 %v4857_v61, %v5240_v16  ;;  %v2290_v44 = vmul.f32 %v4857_v61, %v5229_v0  ;;  %v4867_v59 = vsel %vm628_vm8, %v4857_v61, %v2276_v24  ;;  %v2308_v1 = vmul.f32 %v4857_v61, %v5237_v20 }
 0x271   :  { %1918 = vmatpush.msra.mxu0 %v1883_v58  ;;  %1938 = vmatpush.msra.mxu1 %v1884_v47  ;;  %v2309_v3 = vmul.f32 %v4867_v59, %v5238_v43  ;;  %v2287_v39 = vmul.f32 %v4857_v61, %v5233_v48  ;;  %v2306_v5 = vmul.f32 %v4867_v59, %v5241_v14  ;;  %v3077_v47 = vunpack.i.h.bf16 %v4836_v4 }
 0x272   :  { %v3153_v16 = vpack.i.bf16 %v2305_v49, %v4848_v60  ;;  %v3203_v0 = vpack.i.bf16 %v2290_v44, %v4848_v60  ;;  %v2293_v40 = vmul.f32 %v4857_v61, %v5225_v8  ;;  %v2281_v53 = vmul.f32 %v4639_v15, %v4857_v61 }
 0x273   :  { %1919 = vmatpush.msra.mxu0 %v1881_v35  ;;  %1939 = vmatpush.msra.mxu1 %v1882_v18  ;;  %v3148_v24 = vpack.i.bf16 %v2309_v3, %v2308_v1  ;;  %v3218_v48 = vpack.i.bf16 %v2287_v39, %v4848_v60  ;;  %v3163_v13 = vpack.i.bf16 %v4848_v60, %v2306_v5  ;;  %v3076_v15 = vunpack.i.l.bf16 %v4836_v4 }
 0x274   :  { %3154 = vrot.lane.b32.xlu0 %v3153_v16, %s3409_s21  ;;  %3204 = vrot.lane.b32.xlu1 %v3203_v0, %s3409_s21  ;;  %v2302_v38 = vmul.f32 %v4857_v61, %v5243_v51  ;;  %v2303_v19 = vmul.f32 %v4867_v59, %v5244_v25  ;;  %v3183_v25 = vpack.i.bf16 %v2293_v40, %v4848_v60  ;;  %v3061_v49 = vunpack.i.l.bf16 %v4840_v32 }
 0x275   :  { %3149 = vrot.lane.b32.xlu2 %v3148_v24, %s3409_s21  ;;  %v4880_v20 = vpop.permute.xlu2 %3119  ;;  %v3080_v43 = vpop.permute.xlu0 %3079  ;;  %v3233_v58 = vpack.i.bf16 %v2281_v53, %v4848_v60  ;;  %v3057_v1 = vunpack.i.h.bf16 %v4829_v10  ;;  %v1998_v3 = vsel %vm906_vm5, %v3091_v52, %v3092_v21  ;;  %v2299_v35 = vmul.f32 %v4857_v61, %v5245_v9 }
 0x276   :  { %v3122_v36 = vunpack.i.h.bf16 %v4880_v20  ;;  %v3121_v17 = vunpack.i.l.bf16 %v4880_v20  ;;  %v3082_v6 = vunpack.i.h.bf16 %v3080_v43  ;;  %v3081_v57 = vunpack.i.l.bf16 %v3080_v43 }
 0x277   :  { %v4886_v62 = vpop.permute.xlu1 %3069  ;;  %v3178_v44 = vpack.i.bf16 %v2303_v19, %v2302_v38  ;;  %v2300_v0 = vmul.f32 %v4867_v59, %v5246_v54  ;;  %v1993_v24 = vsel %vm906_vm5, %v3066_v30, %v3067_v41  ;;  %v3062_v43 = vunpack.i.h.bf16 %v4840_v32 }
 0x278   :  { %v2110_v2 = vsel %vm2100_vm11, %v3121_v17, %v3122_v36  ;;  %v1999_v7 = vsel %vm906_vm5, %v3081_v57, %v3082_v6  ;;  %v3072_v11 = vunpack.i.h.bf16 %v4886_v62  ;;  %v3071_v4 = vunpack.i.l.bf16 %v4886_v62 }
 0x279   :  { %2155 = vmatpush.msrb.mxu1 %v2110_v2  ;;  %2022 = vmatpush.msrb.mxu2 %v1999_v7  ;;  %v1996_v9 = vsel %vm906_vm5, %v3076_v15, %v3077_v47  ;;  %v1991_v36 = vsel %vm906_vm5, %v3057_v1, %v3061_v49  ;;  %v2294_v5 = vmul.f32 %v4867_v59, %v5226_v34  ;;  %v3107_v54 = vunpack.i.h.bf16 %v4850_v23 }
 0x27a   :  { %v1995_v33 = vsel %vm906_vm5, %v3072_v11, %v3076_v15  ;;  %v1994_v2 = vsel %vm906_vm5, %v3067_v41, %v3071_v4  ;;  %v3198_v7 = vpack.i.bf16 %v2300_v0, %v2299_v35  ;;  %v2296_v53 = vmul.f32 %v4687_v45, %v4857_v61 }
 0x27b   :  { %v3193_v34 = vpack.i.bf16 %v4848_v60, %v2294_v5  ;;  %v2297_v38 = vmul.f32 %v4693_v29, %v4867_v59  ;;  %v2284_v30 = vmul.f32 %v4857_v61, %v5235_v22 }
 0x27c   :  { %3169 = vrot.lane.b32.xlu0 %v5263_v28, %s3416_s0  ;;  %3219 = vrot.lane.b32.xlu1 %v3218_v48, %s3409_s21 }
 0x27d   :  { %3164 = vrot.lane.b32.xlu2 %v3163_v13, %s3409_s21  ;;  %v4900_v14 = vpop.permute.xlu2 %3134  ;;  %v4902_v56 = vpop.permute.xlu0 %3094  ;;  %v3213_v41 = vpack.i.bf16 %v2297_v38, %v2296_v53 }
 0x27e   :  { %v3137_v50 = vunpack.i.h.bf16 %v4900_v14  ;;  %v3136_v26 = vunpack.i.l.bf16 %v4900_v14  ;;  %v3097_v18 = vunpack.i.h.bf16 %v4902_v56  ;;  %v3096_v16 = vunpack.i.l.bf16 %v4902_v56 }
 0x27f   :  { %v3085_v12 = vpop.permute.xlu1 %3084 }
 0x280   :  { %v3087_v55 = vunpack.i.h.bf16 %v3085_v12  ;;  %v3086_v42 = vunpack.i.l.bf16 %v3085_v12  ;;  %v2108_v8 = vsel %vm2100_vm11, %v3136_v26, %v3137_v50  ;;  %v2219_v32 = vsel %vm2100_vm11, %v3096_v16, %v3097_v18 }
 0x281   :  { %2156 = vmatpush.msrb.mxu1 %v2108_v8  ;;  %v1992_v50 = vsel %vm906_vm5, %v3061_v49, %v3062_v43  ;;  %v2291_v8 = vmul.f32 %v4867_v59, %v5230_v63  ;;  %v2285_v63 = vmul.f32 %v4867_v59, %v5236_v37 }
 0x282   :  { %v1997_v51 = vsel %vm906_vm5, %v3087_v55, %v3091_v52  ;;  %v2000_v27 = vsel %vm906_vm5, %v3082_v6, %v3086_v42  ;;  %v3106_v6 = vunpack.i.l.bf16 %v4850_v23 }
 0x283   :  { %2023 = vmatpush.msrb.mxu2 %v1997_v51  ;;  %2042 = vmatpush.msrb.mxu3 %v2000_v27  ;;  %v3208_v29 = vpack.i.bf16 %v4848_v60, %v2291_v8  ;;  %v2288_v27 = vmul.f32 %v4867_v59, %v5234_v31  ;;  %v3228_v47 = vpack.i.bf16 %v2285_v63, %v2284_v30  ;;  %v2530_v63 = vld [vmem:[%s5048_s8] sm:$0xff]  ;;  %s3418_s8 = smov [#allocation12]  }
 0x284   :  { %3184 = vrot.lane.b32.xlu0 %v3183_v25, %s3409_s21  ;;  %3234 = vrot.lane.b32.xlu1 %v3233_v58, %s3409_s21  ;;  %v2218_v23 = vsel %vm2100_vm11, %v3106_v6, %v3107_v54  ;;  %v2282_v31 = vmul.f32 %v4645_v46, %v4867_v59  ;;  %v1835_v59 = vld [vmem:[#allocation11 + $0x30] sm:$0xff]  ;;  %s2552_s29 = sshll.u32 %s3418_s8, 4  ;;  %s2553_s29 = int_to_ptr.vmem [resolvable:$true] %s2552_s29 }
 0x285   :  { %3179 = vrot.lane.b32.xlu2 %v3178_v44, %s3409_s21  ;;  %2024 = vmatpush.msrb.mxu2 %v1995_v33  ;;  %v3110_v10 = vpop.permute.xlu0 %3109  ;;  %v3223_v22 = vpack.i.bf16 %v4848_v60, %v2288_v27 }
 0x286   :  { %2043 = vmatpush.msrb.mxu3 %v1998_v3  ;;  %v3112_v48 = vunpack.i.h.bf16 %v3110_v10  ;;  %v3111_v13 = vunpack.i.l.bf16 %v3110_v10  ;;  %2612 = vmatmul.msk.f32.vlgmr.msra.gmra.mxu0 %vm539_vm10, %v1835_v59 }
 0x287   :  { %v3100_v39 = vpop.permute.xlu1 %3099  ;;  %2025 = vmatpush.msrb.mxu2 %v1993_v24  ;;  %2613 = vmatmul.msk.f32.vlgmr.msra.gmra.mxu1 %vm539_vm10, %v1835_v59 }
 0x288   :  { %v3102_v57 = vunpack.i.h.bf16 %v3100_v39  ;;  %v3101_v62 = vunpack.i.l.bf16 %v3100_v39  ;;  %2044 = vmatpush.msrb.mxu3 %v1996_v9  ;;  %v2215_v21 = vsel %vm2100_vm11, %v3111_v13, %v3112_v48 }
 0x289   :  { %2026 = vmatpush.msrb.mxu2 %v1991_v36 }
 0x28a   :  { %2045 = vmatpush.msrb.mxu3 %v1994_v2  ;;  %v2217_v28 = vsel %vm2100_vm11, %v3102_v57, %v3106_v6  ;;  %v2220_v56 = vsel %vm2100_vm11, %v3097_v18, %v3101_v62  ;;  %2614 = vmatmul.msk.f32.vlgmr.msrb.gmra.mxu2 %vm539_vm10, %v1835_v59 }
 0x28b   :  { %2242 = vmatpush.msra.mxu2 %v2219_v32 }
 0x28c   :  { %2046 = vmatpush.msrb.mxu3 %v1992_v50  ;;  %3199 = vrot.lane.b32.xlu0 %v3198_v7, %s3409_s21 }
 0x28d   :  { %2243 = vmatpush.msra.mxu2 %v2217_v28  ;;  %v3125_v40 = vpop.permute.xlu0 %3124  ;;  %3194 = vrot.lane.b32.xlu2 %v3193_v34, %s3409_s21 }
 0x28e   :  { %2262 = vmatpush.msra.mxu3 %v2220_v56  ;;  %v3127_v52 = vunpack.i.h.bf16 %v3125_v40  ;;  %v3126_v12 = vunpack.i.l.bf16 %v3125_v40 }
 0x28f   :  { %2244 = vmatpush.msra.mxu2 %v2215_v21  ;;  %v3115_v19 = vpop.permute.xlu1 %3114  ;;  %2615 = vmatmul.msk.f32.vlgmr.msrb.gmra.mxu3 %vm539_vm10, %v1835_v59 }
 0x290   :  { %2263 = vmatpush.msra.mxu3 %v2218_v23  ;;  %v3117_v11 = vunpack.i.h.bf16 %v3115_v19  ;;  %v3116_v55 = vunpack.i.l.bf16 %v3115_v19  ;;  %v2213_v42 = vsel %vm2100_vm11, %v3126_v12, %v3127_v52 }
 0x291   :  { %2245 = vmatpush.msra.mxu2 %v2213_v42 }
 0x292   :  { %v2109_v45 = vsel %vm2100_vm11, %v3117_v11, %v3121_v17  ;;  %v2216_v15 = vsel %vm2100_vm11, %v3112_v48, %v3116_v55 }
 0x293   :  { %2135 = vmatpush.msrb.mxu0 %v2109_v45  ;;  %2264 = vmatpush.msra.mxu3 %v2216_v15 }
 0x294   :  { %3214 = vrot.lane.b32.xlu0 %v3213_v41, %s3409_s21 }
 0x295   :  { %3209 = vrot.lane.b32.xlu2 %v3208_v29, %s3409_s21  ;;  %v3140_v49 = vpop.permute.xlu0 %3139 }
 0x296   :  { %v3142_v37 = vunpack.i.h.bf16 %v3140_v49  ;;  %v3141_v16 = vunpack.i.l.bf16 %v3140_v49 }
 0x297   :  { %v3130_v20 = vpop.permute.xlu1 %3129 }
 0x298   :  { %v3132_v51 = vunpack.i.h.bf16 %v3130_v20  ;;  %v3131_v17 = vunpack.i.l.bf16 %v3130_v20  ;;  %v2211_v46 = vsel %vm2100_vm11, %v3141_v16, %v3142_v37 }
 0x299   :  { %2246 = vmatpush.msra.mxu2 %v2211_v46 }
 0x29a   :  { %v2107_v25 = vsel %vm2100_vm11, %v3132_v51, %v3136_v26  ;;  %v2214_v58 = vsel %vm2100_vm11, %v3127_v52, %v3131_v17  ;;  %v3238_v26 = vpack.i.bf16 %v4848_v60, %v2282_v31  ;;  %v2054_v60 = vld [vmem:[#allocation11 + $0x38] sm:$0xff]  ;;  %v3417_v51 = vmov 0  }
 0x29b   :  { %2136 = vmatpush.msrb.mxu0 %v2107_v25  ;;  %2265 = vmatpush.msra.mxu3 %v2214_v58 }
 0x29c   :  { %3229 = vrot.lane.b32.xlu0 %v3228_v47, %s3409_s21  ;;  %2618 = vmatmul.msk.f32.vlgmr.msra.gmra.mxu2 %vm539_vm10, %v2054_v60 }
 0x29d   :  { %3224 = vrot.lane.b32.xlu2 %v3223_v22, %s3409_s21  ;;  %3243 = vset.pattern.permute.xlu0 %v3417_v51 }
 0x29f   :  { %v3145_v61 = vpop.permute.xlu1 %3144 }
 0x2a0   :  { %v3146_v44 = vunpack.i.l.bf16 %v3145_v61  ;;  %v3147_v33 = vunpack.i.h.bf16 %v3145_v61 }
 0x2a2   :  { %v2212_v14 = vsel %vm2100_vm11, %v3142_v37, %v3146_v44 }
 0x2a3   :  { %2266 = vmatpush.msra.mxu3 %v2212_v14 }
 0x2a4   :  { %2619 = vmatmul.msk.f32.vlgmr.msra.gmra.mxu3 %vm539_vm10, %v2054_v60  ;;  %2533 = vperm.xlu0 %3243, %v2530_v63  }
 0x2a5   :  { %3239 = vrot.lane.b32.xlu2 %v3238_v26, %s3409_s21 }
 0x2a7   :  { %v3160_v1 = vpop.permute.xlu1 %3159 }
 0x2a8   :  { %v3162_v3 = vunpack.i.h.bf16 %v3160_v1  ;;  %v3161_v35 = vunpack.i.l.bf16 %v3160_v1 }
 0x2aa   :  { %v2105_v4 = vsel %vm2100_vm11, %v3147_v33, %v3161_v35  ;;  %v2106_v18 = vsel %vm2100_vm11, %v3161_v35, %v3162_v3 }
 0x2ab   :  { %2137 = vmatpush.msrb.mxu0 %v2105_v4  ;;  %2157 = vmatpush.msrb.mxu1 %v2106_v18 }
 0x2af   :  { %v3175_v9 = vpop.permute.xlu1 %3174 }
 0x2b0   :  { %v3176_v23 = vunpack.i.l.bf16 %v3175_v9  ;;  %v3177_v52 = vunpack.i.h.bf16 %v3175_v9 }
 0x2b7   :  { %v3190_v6 = vpop.permute.xlu1 %3189 }
 0x2b8   :  { %v3192_v34 = vunpack.i.h.bf16 %v3190_v6  ;;  %v3191_v40 = vunpack.i.l.bf16 %v3190_v6 }
 0x2ba   :  { %v2102_v11 = vsel %vm2100_vm11, %v3191_v40, %v3192_v34  ;;  %v2101_v29 = vsel %vm2100_vm11, %v3177_v52, %v3191_v40  ;;  %v899_v40 = vpop.f32.mrf.mxu3 }
 0x2cf   :  { %v3150_v10 = vpop.permute.xlu2 %3149 }
 0x2d0   :  { %v3152_v0 = vunpack.i.h.bf16 %v3150_v10  ;;  %v3151_v24 = vunpack.i.l.bf16 %v3150_v10 }
 0x2d2   :  { %v2476_v43 = vsel %vm436_vm4, %v3151_v24, %v3152_v0 }
 0x2d3   :  { %2499 = vmatpush.msrb.mxu2 %v2476_v43 }
 0x2d7   :  { %v3165_v39 = vpop.permute.xlu2 %3164 }
 0x2d8   :  { %v3167_v57 = vunpack.i.h.bf16 %v3165_v39  ;;  %v3166_v62 = vunpack.i.l.bf16 %v3165_v39 }
 0x2da   :  { %v2475_v50 = vsel %vm436_vm4, %v3166_v62, %v3167_v57 }
 0x2df   :  { %v3180_v36 = vpop.permute.xlu2 %3179 }
 0x2e0   :  { %v3182_v54 = vunpack.i.h.bf16 %v3180_v36  ;;  %v3181_v2 = vunpack.i.l.bf16 %v3180_v36 }
 0x2e2   :  { %v2472_v56 = vsel %vm436_vm4, %v3181_v2, %v3182_v54 }
 0x2e6   :  { %v3155_v5 = vpop.permute.xlu0 %3154  ;;  %v3205_v53 = vpop.permute.xlu1 %3204 }
 0x2e7   :  { %v3157_v32 = vunpack.i.h.bf16 %v3155_v5  ;;  %v3156_v7 = vunpack.i.l.bf16 %v3155_v5  ;;  %v3195_v48 = vpop.permute.xlu2 %3194  ;;  %v3207_v58 = vunpack.i.h.bf16 %v3205_v53  ;;  %v3206_v3 = vunpack.i.l.bf16 %v3205_v53 }
 0x2e8   :  { %v3197_v55 = vunpack.i.h.bf16 %v3195_v48  ;;  %v3196_v42 = vunpack.i.l.bf16 %v3195_v48 }
 0x2e9   :  { %v2474_v13 = vsel %vm436_vm4, %v3157_v32, %v3166_v62  ;;  %v2477_v28 = vsel %vm436_vm4, %v3152_v0, %v3156_v7  ;;  %v2312_v0 = vld [vmem:[#allocation11 + $0x40] sm:$0xff] }
 0x2ea   :  { %2500 = vmatpush.msrb.mxu2 %v2474_v13  ;;  %2519 = vmatpush.msrb.mxu3 %v2477_v28  ;;  %v2367_v30 = vsel %vm436_vm4, %v3196_v42, %v3197_v55  ;;  %v560_v28 = vpop.f32.mrf.mxu0 }
 0x2ec   :  { %2501 = vmatpush.msrb.mxu2 %v2472_v56  ;;  %2520 = vmatpush.msrb.mxu3 %v2475_v50  ;;  %v580_v56 = vpop.f32.mrf.mxu1 }
 0x2ee   :  { %v3170_v21 = vpop.permute.xlu0 %3169  ;;  %v3220_v47 = vpop.permute.xlu1 %3219 }
 0x2ef   :  { %v3172_v12 = vunpack.i.h.bf16 %v3170_v21  ;;  %v3171_v38 = vunpack.i.l.bf16 %v3170_v21  ;;  %v3210_v19 = vpop.permute.xlu2 %3209  ;;  %v3222_v31 = vunpack.i.h.bf16 %v3220_v47  ;;  %v3221_v59 = vunpack.i.l.bf16 %v3220_v47 }
 0x2f0   :  { %v3212_v15 = vunpack.i.h.bf16 %v3210_v19  ;;  %v3211_v41 = vunpack.i.l.bf16 %v3210_v19 }
 0x2f1   :  { %v2103_v8 = vsel %vm2100_vm11, %v3171_v38, %v3172_v12  ;;  %v2104_v45 = vsel %vm2100_vm11, %v3172_v12, %v3176_v23  ;;  %v879_v23 = vpop.f32.mrf.mxu2  ;;  %v1156_v12 = vpop.f32.mrf.mxu3 }
 0x2f2   :  { %2138 = vmatpush.msrb.mxu0 %v2103_v8  ;;  %2158 = vmatpush.msrb.mxu1 %v2104_v45  ;;  %v2365_v25 = vsel %vm436_vm4, %v3211_v41, %v3212_v15  ;;  %v2364_v26 = vsel %vm436_vm4, %v3207_v58, %v3211_v41  ;;  %v669_v50 = vpop.f32.mrf.mxu0 }
 0x2f3   :  { %v670_v47 = vadd.f32 %v669_v50, %v560_v28 }
 0x2f4   :  { %2139 = vmatpush.msrb.mxu0 %v2101_v29  ;;  %2159 = vmatpush.msrb.mxu1 %v2102_v11  ;;  %v689_v34 = vpop.f32.mrf.mxu1 }
 0x2f5   :  { %2616 = vmatmul.msk.f32.vlgmr.msrb.gmra.mxu0 %vm539_vm10, %v2054_v60  ;;  %2617 = vmatmul.msk.f32.vlgmr.msrb.gmra.mxu1 %vm539_vm10, %v2054_v60 }
 0x2f6   :  { %2412 = vmatpush.msra.mxu1 %v2367_v30  ;;  %v3185_v20 = vpop.permute.xlu0 %3184  ;;  %v3235_v39 = vpop.permute.xlu1 %3234 }
 0x2f7   :  { %v3187_v17 = vunpack.i.h.bf16 %v3185_v20  ;;  %v3186_v27 = vunpack.i.l.bf16 %v3185_v20  ;;  %v3225_v49 = vpop.permute.xlu2 %3224  ;;  %v3236_v36 = vunpack.i.l.bf16 %v3235_v39  ;;  %v3237_v2 = vunpack.i.h.bf16 %v3235_v39 }
 0x2f8   :  { %2413 = vmatpush.msra.mxu1 %v2365_v25  ;;  %v3227_v22 = vunpack.i.h.bf16 %v3225_v49  ;;  %v3226_v37 = vunpack.i.l.bf16 %v3225_v49  ;;  %v690_v49 = vadd.f32 %v689_v34, %v580_v56 }
 0x2f9   :  { %v2366_v61 = vsel %vm436_vm4, %v3187_v17, %v3196_v42  ;;  %v2473_v44 = vsel %vm436_vm4, %v3182_v54, %v3186_v27  ;;  %v1136_v52 = vpop.f32.mrf.mxu2  ;;  %v1415_v55 = vpop.f32.mrf.mxu3 }
 0x2fa   :  { %2392 = vmatpush.msra.mxu0 %v2366_v61  ;;  %2521 = vmatpush.msrb.mxu3 %v2473_v44  ;;  %v2363_v14 = vsel %vm436_vm4, %v3226_v37, %v3227_v22  ;;  %v2362_v1 = vsel %vm436_vm4, %v3222_v31, %v3226_v37  ;;  %v774_v53 = vpop.f32.mrf.mxu0 }
 0x2fb   :  { %2414 = vmatpush.msra.mxu1 %v2363_v14  ;;  %v880_v20 = vadd.f32 %v879_v23, %v774_v53 }
 0x2fc   :  { %2393 = vmatpush.msra.mxu0 %v2364_v26  ;;  %v794_v21 = vpop.f32.mrf.mxu1 }
 0x2fd   :  { %v900_v51 = vadd.f32 %v899_v40, %v794_v21  ;;  %v1159_v25 = vadd.f32 %v1136_v52, %v880_v20 }
 0x2fe   :  { %v3200_v33 = vpop.permute.xlu0 %3199  ;;  %2394 = vmatpush.msra.mxu0 %v2362_v1 }
 0x2ff   :  { %v3202_v35 = vunpack.i.h.bf16 %v3200_v33  ;;  %v3201_v4 = vunpack.i.l.bf16 %v3200_v33  ;;  %v3240_v9 = vpop.permute.xlu2 %3239  ;;  %v1160_v58 = vadd.f32 %v1156_v12, %v900_v51 }
 0x300   :  { %v3242_v57 = vunpack.i.h.bf16 %v3240_v9  ;;  %v3241_v62 = vunpack.i.l.bf16 %v3240_v9 }
 0x301   :  { %v2470_v18 = vsel %vm436_vm4, %v3201_v4, %v3202_v35  ;;  %v2471_v16 = vsel %vm436_vm4, %v3202_v35, %v3206_v3  ;;  %v1395_v11 = vpop.f32.mrf.mxu2  ;;  %v1504_v15 = vpop.f32.mrf.mxu3  ;;  %v1419_v44 = vadd.f32 %v1415_v55, %v1160_v58 }
 0x302   :  { %2502 = vmatpush.msrb.mxu2 %v2470_v18  ;;  %2522 = vmatpush.msrb.mxu3 %v2471_v16  ;;  %v2358_v48 = vsel %vm436_vm4, %v3237_v2, %v3241_v62  ;;  %v2359_v13 = vsel %vm436_vm4, %v3241_v62, %v3242_v57  ;;  %v1029_v38 = vpop.f32.mrf.mxu0  ;;  %v1418_v61 = vadd.f32 %v1395_v11, %v1159_v25 }
 0x303   :  { %v1052_v31 = vadd.f32 %v1029_v38, %v670_v47  ;;  %v1508_v1 = vadd.f32 %v1504_v15, %v1419_v44 }
 0x304   :  { %v1049_v19 = vpop.f32.mrf.mxu1 }
 0x305   :  { %v1053_v14 = vadd.f32 %v1049_v19, %v690_v49 }
 0x306   :  { %v3215_v46 = vpop.permute.xlu0 %3214 }
 0x307   :  { %v3217_v60 = vunpack.i.h.bf16 %v3215_v46  ;;  %v3216_v10 = vunpack.i.l.bf16 %v3215_v46 }
 0x309   :  { %v2468_v24 = vsel %vm436_vm4, %v3216_v10, %v3217_v60  ;;  %v2469_v43 = vsel %vm436_vm4, %v3217_v60, %v3221_v59  ;;  %v1484_v45 = vpop.f32.mrf.mxu2  ;;  %v1791_v63 = vpop.f32.mrf.mxu3 }
 0x30a   :  { %2503 = vmatpush.msrb.mxu2 %v2468_v24  ;;  %2523 = vmatpush.msrb.mxu3 %v2469_v43  ;;  %v1288_v42 = vpop.f32.mrf.mxu0  ;;  %v1507_v26 = vadd.f32 %v1484_v45, %v1418_v61  ;;  %v1795_v16 = vadd.f32 %v1791_v63, %v1508_v1 }
 0x30b   :  { %2622 = vmatmul.msk.f32.vlgmr.msrb.gmra.mxu2 %vm539_vm10, %v2312_v0  ;;  %2623 = vmatmul.msk.f32.vlgmr.msrb.gmra.mxu3 %vm539_vm10, %v2312_v0  ;;  %v1311_v35 = vadd.f32 %v1288_v42, %v1052_v31 }
 0x30c   :  { %v1308_v8 = vpop.f32.mrf.mxu1 }
 0x30d   :  { %v1312_v4 = vadd.f32 %v1308_v8, %v1053_v14 }
 0x30e   :  { %v3230_v6 = vpop.permute.xlu0 %3229 }
 0x30f   :  { %v3232_v5 = vunpack.i.h.bf16 %v3230_v6  ;;  %v3231_v54 = vunpack.i.l.bf16 %v3230_v6 }
 0x311   :  { %v2360_v32 = vsel %vm436_vm4, %v3231_v54, %v3232_v5  ;;  %v2361_v7 = vsel %vm436_vm4, %v3232_v5, %v3236_v36  ;;  %v1771_v30 = vpop.f32.mrf.mxu2 }
 0x312   :  { %2395 = vmatpush.msra.mxu0 %v2360_v32  ;;  %2415 = vmatpush.msra.mxu1 %v2361_v7  ;;  %v1442_v41 = vpop.f32.mrf.mxu0  ;;  %v2048_v37 = vpop.f32.mrf.mxu3  ;;  %v1794_v18 = vadd.f32 %v1771_v30, %v1507_v26 }
 0x313   :  { %v1465_v60 = vadd.f32 %v1442_v41, %v1311_v35  ;;  %v2052_v24 = vadd.f32 %v2048_v37, %v1795_v16 }
 0x314   :  { %2396 = vmatpush.msra.mxu0 %v2358_v48  ;;  %2416 = vmatpush.msra.mxu1 %v2359_v13  ;;  %v1462_v29 = vpop.f32.mrf.mxu1 }
 0x315   :  { %2620 = vmatmul.msk.f32.vlgmr.msra.gmra.mxu0 %vm539_vm10, %v2312_v0  ;;  %2621 = vmatmul.msk.f32.vlgmr.msra.gmra.mxu1 %vm539_vm10, %v2312_v0  ;;  %v1466_v10 = vadd.f32 %v1462_v29, %v1312_v4 }
 0x316   :  { %v2534_v62 = vpop.permute.xlu0 %2533 }
 0x319   :  { %v2028_v22 = vpop.f32.mrf.mxu2 }
 0x31a   :  { %v1664_v17 = vpop.f32.mrf.mxu0  ;;  %v2051_v0 = vadd.f32 %v2028_v22, %v1794_v18 }
 0x31b   :  { %v1687_v9 = vadd.f32 %v1664_v17, %v1465_v60 }
 0x31c   :  { %v1684_v27 = vpop.f32.mrf.mxu1 }
 0x31d   :  { %v1688_v36 = vadd.f32 %v1684_v27, %v1466_v10 }
 0x321   :  { %v2248_v46 = vpop.f32.mrf.mxu2 }
 0x322   :  { %v1921_v33 = vpop.f32.mrf.mxu0  ;;  %v2271_v6 = vadd.f32 %v2248_v46, %v2051_v0 }
 0x323   :  { %v1944_v2 = vadd.f32 %v1921_v33, %v1687_v9 }
 0x324   :  { %v1941_v3 = vpop.f32.mrf.mxu1 }
 0x325   :  { %v1945_v32 = vadd.f32 %v1941_v3, %v1688_v36 }
 0x327   :  { %v2268_v59 = vpop.f32.mrf.mxu3 }
 0x328   :  { %v2272_v57 = vadd.f32 %v2268_v59, %v2052_v24 }
 0x372   :  { %v2141_v43 = vpop.f32.mrf.mxu0  ;;  %v2161_v39 = vpop.f32.mrf.mxu1 }
 0x373   :  { %v2164_v13 = vadd.f32 %v2141_v43, %v1944_v2  ;;  %v2165_v28 = vadd.f32 %v2161_v39, %v1945_v32 }
 0x38e   :  { %v2505_v5 = vpop.f32.mrf.mxu2  ;;  %v2525_v54 = vpop.f32.mrf.mxu3 }
 0x38f   :  { %v2528_v7 = vadd.f32 %v2505_v5, %v2271_v6  ;;  %v2529_v48 = vadd.f32 %v2525_v54, %v2272_v57 }
 0x391   :  { %v2542_v56 = vadd.f32 %v2534_v62, %v2528_v7  ;;  %v2543_v50 = vadd.f32 %v2534_v62, %v2529_v48 }
 0x392   :  { %v2398_v34 = vpop.f32.mrf.mxu0  ;;  %v2418_v23 = vpop.f32.mrf.mxu1 }
 0x393   :  { %v2544_v40 = vmax.f32 %v2542_v56, 0.0  ;;  %v2545_v53 = vmax.f32 %v2543_v50, 0.0  ;;  %v2421_v21 = vadd.f32 %v2398_v34, %v2164_v13  ;;  %v2422_v52 = vadd.f32 %v2418_v23, %v2165_v28 }
 0x395   :  { %2546 = vst [vmem:[#allocation12 + $0x10] sm:$0xff] %v2544_v40  ;;  %v2536_v12 = vadd.f32 %v2534_v62, %v2421_v21  ;;  %v2537_v38 = vadd.f32 %v2534_v62, %v2422_v52 }
 0x396   :  { %2547 = vst [vmem:[#allocation12 + $0x18] sm:$0xff] %v2545_v53 }
 0x397   :  { %v2538_v19 = vmax.f32 %v2536_v12, 0.0  ;;  %v2539_v11 = vmax.f32 %v2537_v38, 0.0 }
 0x399   :  { %2540 = vst [vmem:[#allocation12] sm:$0xff] %v2538_v19 }
 0x39a   :  { %2541 = vst [vmem:[#allocation12 + $0x8] sm:$0xff] %v2539_v11 }
 0x39b   :  { %2560 = dma.vmem_to_hbm [thread:$0]  %s2553_s29, 512, %s2555_s9, [#allocation5], %s3404_s27, %s3404_s27, %s3405_s28  }
 0x39c   :  { %3398 = dma.done.wait [#allocation5], 512  }
 0x39d   :  { %3399 = vsyncadd [#allocation5], 4294966784 }
 0x39e   :  { %2565 = vsyncpa [#allocation4], 1 }
 0x39f   :  { %2566 = vsyncpa [#allocation7], 1 }
 0x3a0   :  { %2567 = vsyncpa [#allocation10], 1 }
 0x3a1   :  { %2568 = vsyncpa [#allocation5], 1 }

</bundles_post_ra>
